<compile_context>
chip_gen: v7x
topology: tpu7x:2x2x1
jax: 0.10.0
libtpu: 0.0.40
codegen_flags: <defaults>
</compile_context>

<pallas_src>
import jax
import jax.numpy as jnp
from jax.experimental import pallas as pl
from jax.experimental.pallas import tpu as pltpu

# ---- hyperparameters implied by the module (small, synthetic) ----
VOCAB_SIZE = 64
PAD = 0                      # ws.PAD / padding_idx / padding_value
EMBEDDING_DIM = 32
ENCODER_HIDDEN_SIZE = 32
ENCODER_NUM_LAYERS = 2       # kernel below is specialized to 2 layers
MAX_SEQ_LEN = 8
ENCODER_DROP_OUT = 0.1       # stored in __init__ but unused in eval forward


# ----------------------------- fused Pallas kernel -----------------------------
def num_encoder_kernel(ints_ref, w0_ref, wrec_ref, b_ref, out_ref):
    Bp = out_ref.shape[0]
    TB = ints_ref.shape[0] - Bp
    T = TB // Bp
    H = out_ref.shape[1] // (T + 2)
    V = w0_ref.shape[0]
    f32 = jnp.float32

    # ---- split the packed int32 slab: time-major token ids, then lengths ----
    tok = ints_ref[0:TB, :]            # [T*Bp, 1] int32 (row t*Bp+b -> (t, b))
    lens = ints_ref[TB:TB + Bp, :]     # [Bp, 1]  int32

    # ---- hoisted validity masks (independent of the recurrent chain) ----
    mask = [(lens > t).astype(f32) for t in range(T)]          # T x [Bp, 1]

    # ---- biases (sliced once, in the prologue) ----
    bi0 = b_ref[0:1, 0:3 * H]          # b_i0 with r/z halves pre-summed with b_h0
    bi1 = b_ref[1:2, 0:3 * H]
    bhn0 = b_ref[0:1, 3 * H:4 * H]     # b_hn kept separate: n = tanh(x_n + r*(h@Whn + b_hn))
    bhn1 = b_ref[1:2, 3 * H:4 * H]

    # ---- embedding folded into layer-0 input projection (one MXU prologue op, bf16) ----
    vocab_iota = jax.lax.broadcasted_iota(jnp.int32, (TB, V), 1)
    one_hot = (tok == vocab_iota).astype(jnp.bfloat16)          # [T*Bp, V]
    xproj0 = jnp.dot(one_hot, w0_ref[...],
                     preferred_element_type=f32) + bi0          # [T*Bp, 3H] f32

    # loop-invariant merged recurrent RHS: blockdiag(Wh0, Wh1, Wi1), bf16 [3H, 9H]
    wrec = wrec_ref[...]

    def gru_cell(xp, hp, bhn, h_prev):
        # one sigmoid for r|z together (single EUP push), one tanh; f32 gate math
        rz = jax.nn.sigmoid((xp + hp)[:, 0:2 * H])
        r = rz[:, 0:H]
        z = rz[:, H:2 * H]
        n = jnp.tanh(xp[:, 2 * H:3 * H] + r * (hp[:, 2 * H:3 * H] + bhn))
        return (1.0 - z) * n + z * h_prev

    zeros_h = jnp.zeros((Bp, H), f32)
    h0, h1 = zeros_h, zeros_h

    # ---- round 0: layer-0 step t=0 (h0 == 0 -> recurrent matmul is zero, skip it) ----
    h0_new = gru_cell(xproj0[0:Bp, :], jnp.zeros((Bp, 3 * H), f32), bhn0, h0)
    out0_prev = mask[0] * h0_new                                # PAD == 0
    h0 = h0 + mask[0] * (h0_new - h0)

    # ---- skewed recurrence: round s runs layer-1 step s-1 and layer-0 step s ----
    for s in range(1, T + 1):
        # ONE merged block-diagonal MXU op per round (bf16 operands, f32 accumulate):
        lhs = jnp.concatenate([h0, h1, out0_prev], axis=1).astype(jnp.bfloat16)  # [Bp, 3H]
        big = jnp.dot(lhs, wrec, preferred_element_type=f32)                     # [Bp, 9H]

        # layer-1 step t = s-1 (consumes layer-0 output produced in the previous round)
        hp1 = big[:, 3 * H:6 * H]
        xp1 = big[:, 6 * H:9 * H] + bi1
        h1_new = gru_cell(xp1, hp1, bhn1, h1)
        m1 = mask[s - 1]
        out_ref[:, (s - 1) * H:s * H] = m1 * h1_new              # stream into lane-dense slab
        h1 = h1 + m1 * (h1_new - h1)

        # layer-0 step t = s (skipped on the final drain round)
        if s < T:
            hp0 = big[:, 0:3 * H]
            h0_new = gru_cell(xproj0[s * Bp:(s + 1) * Bp, :], hp0, bhn0, h0)
            m0 = mask[s]
            out0_prev = m0 * h0_new
            h0 = h0 + m0 * (h0_new - h0)

    # ---- append final hidden states to the same lane-dense output slab ----
    out_ref[:, T * H:(T + 1) * H] = h0
    out_ref[:, (T + 1) * H:(T + 2) * H] = h1


# ----------------------------- parameter init (deterministic) -----------------------------
def init_params(key):
    k_emb, *ks = jax.random.split(key, 1 + 12 * ENCODER_NUM_LAYERS)
    emb = jax.random.normal(k_emb, (VOCAB_SIZE, EMBEDDING_DIM), jnp.float32) * 0.1
    emb = emb.at[PAD].set(0.0)  # padding_idx=ws.PAD

    bound = 1.0 / jnp.sqrt(jnp.float32(ENCODER_HIDDEN_SIZE))
    layers = []
    ki = 0
    for layer in range(ENCODER_NUM_LAYERS):
        Din = EMBEDDING_DIM if layer == 0 else ENCODER_HIDDEN_SIZE
        H = ENCODER_HIDDEN_SIZE

        def u(shape):
            nonlocal ki
            k = ks[ki]; ki += 1
            return jax.random.uniform(k, shape, jnp.float32, -bound, bound)

        layers.append(dict(
            wir=u((Din, H)), wiz=u((Din, H)), win=u((Din, H)),
            whr=u((H, H)),   whz=u((H, H)),   whn=u((H, H)),
            bir=u((1, H)),   biz=u((1, H)),   bin=u((1, H)),
            bhr=u((1, H)),   bhz=u((1, H)),   bhn=u((1, H)),
        ))
    return emb, layers


# ----------------------------- weight packing (wrapper, done once) -----------------------------
def pack_params(emb, layers):
    H = ENCODER_HIDDEN_SIZE
    l0, l1 = layers

    def cat_i(p):
        return jnp.concatenate([p["wir"], p["wiz"], p["win"]], axis=1)   # [Din, 3H]

    def cat_h(p):
        return jnp.concatenate([p["whr"], p["whz"], p["whn"]], axis=1)   # [H, 3H]

    def cat_b(p):
        return jnp.concatenate([p["bir"] + p["bhr"], p["biz"] + p["bhz"], p["bin"]], axis=1)

    wi0, wh0, bi0 = cat_i(l0), cat_h(l0), cat_b(l0)
    wi1, wh1, bi1 = cat_i(l1), cat_h(l1), cat_b(l1)

    # Fold embedding into layer-0 input projection (weight-only): [V, 3H]
    w0 = (emb @ wi0).astype(jnp.bfloat16)

    # Merged block-diagonal recurrent RHS: [h0 | h1 | out0_prev] @ blockdiag(Wh0, Wh1, Wi1)
    Z = jnp.zeros((H, 3 * H), jnp.float32)
    wrec = jnp.concatenate([
        jnp.concatenate([wh0, Z,   Z  ], axis=1),
        jnp.concatenate([Z,   wh1, Z  ], axis=1),
        jnp.concatenate([Z,   Z,   wi1], axis=1)], axis=0).astype(jnp.bfloat16)   # [3H, 9H]

    # One bias slab [2, 4H]: row l = [ bi_l (3H) | bhn_l (H) ]
    biases = jnp.concatenate([
        jnp.concatenate([bi0, l0["bhn"]], axis=1),
        jnp.concatenate([bi1, l1["bhn"]], axis=1)], axis=0)
    return w0, wrec, biases


# ----------------------------- NumEncoder forward -----------------------------
def num_encoder_forward(emb, layers, tokens, lengths):
    """tokens: [B, T] int32, lengths: [B] int32 (sorted descending, as pack requires).
    Returns (out [B, MAX_SEQ_LEN, H], h [num_layers, B, H]) like the PyTorch module."""
    assert ENCODER_NUM_LAYERS == 2
    B, T = tokens.shape
    assert T == MAX_SEQ_LEN
    H = ENCODER_HIDDEN_SIZE

    # Pad batch to a full sublane (8); padded rows get length 0 and are discarded after.
    Bp = max(8, ((B + 7) // 8) * 8)
    pad_b = Bp - B
    tok_p = jnp.pad(tokens.astype(jnp.int32), ((0, pad_b), (0, 0)), constant_values=PAD)
    len_p = jnp.pad(lengths.astype(jnp.int32), ((0, pad_b),), constant_values=0)

    # One packed int32 operand: time-major token ids (row t*Bp+b) followed by lengths.
    tok_tm = jnp.transpose(tok_p, (1, 0)).reshape(T * Bp, 1)
    ints = jnp.concatenate([tok_tm, len_p.reshape(Bp, 1)], axis=0)    # [T*Bp + Bp, 1]

    w0, wrec, biases = pack_params(emb, layers)

    def full(shape):
        zeros = (0,) * len(shape)
        return pl.BlockSpec(shape, lambda i: zeros)

    inputs = (ints, w0, wrec, biases)
    out_cols = (T + 2) * H    # [ out(t=0..T-1) | h0_final | h1_final ]  -> single lane-dense store

    slab = pl.pallas_call(
        num_encoder_kernel,
        grid=(1,),
        in_specs=[full(a.shape) for a in inputs],
        out_specs=full((Bp, out_cols)),
        out_shape=jax.ShapeDtypeStruct((Bp, out_cols), jnp.float32),
        compiler_params=pltpu.CompilerParams(dimension_semantics=("arbitrary",)),
    )(*inputs)

    out = slab[:, :T * H].reshape(Bp, T, H)[:B]                       # [B, T, H] batch-first
    h = jnp.stack([slab[:B, T * H:(T + 1) * H],
                   slab[:B, (T + 1) * H:(T + 2) * H]], axis=0)        # [num_layers, B, H]
    return out, h


# ----------------------------- pure-JAX reference (for sanity check) -----------------------------
def num_encoder_reference(emb, layers, tokens, lengths):
    B, T = tokens.shape
    x = jnp.take(emb, tokens, axis=0)
    inp = x
    hs = []
    for p in layers:
        H = p["whr"].shape[0]
        h = jnp.zeros((B, H), jnp.float32)
        outs = []
        for t in range(T):
            x_t = inp[:, t, :]
            r = jax.nn.sigmoid(x_t @ p["wir"] + p["bir"] + h @ p["whr"] + p["bhr"])
            z = jax.nn.sigmoid(x_t @ p["wiz"] + p["biz"] + h @ p["whz"] + p["bhz"])
            n = jnp.tanh(x_t @ p["win"] + p["bin"] + r * (h @ p["whn"] + p["bhn"]))
            h_new = (1.0 - z) * n + z * h
            valid = (lengths > t)[:, None]
            h = jnp.where(valid, h_new, h)
            outs.append(jnp.where(valid, h_new, float(PAD)))
        inp = jnp.stack(outs, axis=1)
        hs.append(h)
    return inp, jnp.stack(hs, axis=0)


if __name__ == "__main__":
    key = jax.random.PRNGKey(0)
    k_params, k_tok = jax.random.split(key)
    emb, layers = init_params(k_params)

    B, T = 4, MAX_SEQ_LEN
    # lengths sorted descending (pack_padded_sequence enforce_sorted=True default)
    lengths = jnp.array([8, 6, 5, 3], dtype=jnp.int32)
    tokens = jax.random.randint(k_tok, (B, T), 1, VOCAB_SIZE, dtype=jnp.int32)
    # zero out (PAD) tokens beyond each sequence length
    pos = jnp.arange(T)[None, :]
    tokens = jnp.where(pos < lengths[:, None], tokens, PAD)

    out, h = num_encoder_forward(emb, layers, tokens, lengths)
    jax.block_until_ready((out, h))

    out_ref, h_ref = num_encoder_reference(emb, layers, tokens, lengths)
    assert out.shape == (B, MAX_SEQ_LEN, ENCODER_HIDDEN_SIZE)
    assert h.shape == (ENCODER_NUM_LAYERS, B, ENCODER_HIDDEN_SIZE)
    assert jnp.allclose(out, out_ref, rtol=2e-2, atol=2e-2)
    assert jnp.allclose(h, h_ref, rtol=2e-2, atol=2e-2)

    print("KERNEL_OK")
</pallas_src>

<mosaic_0001>
module attributes {stable_mosaic.version = 11 : i64} {
  func.func @num_encoder_kernel(%arg0: i32, %arg1: memref<72x1xi32, #tpu.memory_space<vmem>>, %arg2: memref<64x96xbf16, #tpu.memory_space<vmem>>, %arg3: memref<96x288xbf16, #tpu.memory_space<vmem>>, %arg4: memref<2x128xf32, #tpu.memory_space<vmem>>, %arg5: memref<8x320xf32, #tpu.memory_space<vmem>>) attributes {dimension_semantics = [#tpu.dimension_semantics<arbitrary>], iteration_bounds = array<i64: 1>, scalar_prefetch = 0 : i64, scratch_operands = 0 : i64, tpu.core_type = #tpu.core_type<tc>, window_params = [{pipeline_mode = #tpu.pipeline_mode<synchronous>, transform_indices = @transform_0, window_bounds = array<i64: 72, 1>}, {pipeline_mode = #tpu.pipeline_mode<synchronous>, transform_indices = @transform_1, window_bounds = array<i64: 64, 96>}, {pipeline_mode = #tpu.pipeline_mode<synchronous>, transform_indices = @transform_2, window_bounds = array<i64: 96, 288>}, {pipeline_mode = #tpu.pipeline_mode<synchronous>, transform_indices = @transform_3, window_bounds = array<i64: 2, 128>}, {pipeline_mode = #tpu.pipeline_mode<synchronous>, transform_indices = @transform_4, window_bounds = array<i64: 8, 320>}]} {
    %c0 = arith.constant 0 : index
    %c0_0 = arith.constant 0 : index
    %0 = vector.load %arg1[%c0, %c0_0] : memref<72x1xi32, #tpu.memory_space<vmem>>, vector<64x1xi32>
    %c64 = arith.constant 64 : index
    %c0_1 = arith.constant 0 : index
    %1 = vector.load %arg1[%c64, %c0_1] : memref<72x1xi32, #tpu.memory_space<vmem>>, vector<8x1xi32>
    %c0_i32 = arith.constant 0 : i32
    %2 = vector.broadcast %c0_i32 : i32 to vector<8x1xi32>
    %3 = arith.cmpi sgt, %1, %2 : vector<8x1xi32>
    %4 = arith.extui %3 : vector<8x1xi1> to vector<8x1xi32>
    %5 = arith.sitofp %4 : vector<8x1xi32> to vector<8x1xf32>
    %c1_i32 = arith.constant 1 : i32
    %6 = vector.broadcast %c1_i32 : i32 to vector<8x1xi32>
    %7 = arith.cmpi sgt, %1, %6 : vector<8x1xi32>
    %8 = arith.extui %7 : vector<8x1xi1> to vector<8x1xi32>
    %9 = arith.sitofp %8 : vector<8x1xi32> to vector<8x1xf32>
    %c2_i32 = arith.constant 2 : i32
    %10 = vector.broadcast %c2_i32 : i32 to vector<8x1xi32>
    %11 = arith.cmpi sgt, %1, %10 : vector<8x1xi32>
    %12 = arith.extui %11 : vector<8x1xi1> to vector<8x1xi32>
    %13 = arith.sitofp %12 : vector<8x1xi32> to vector<8x1xf32>
    %c3_i32 = arith.constant 3 : i32
    %14 = vector.broadcast %c3_i32 : i32 to vector<8x1xi32>
    %15 = arith.cmpi sgt, %1, %14 : vector<8x1xi32>
    %16 = arith.extui %15 : vector<8x1xi1> to vector<8x1xi32>
    %17 = arith.sitofp %16 : vector<8x1xi32> to vector<8x1xf32>
    %c4_i32 = arith.constant 4 : i32
    %18 = vector.broadcast %c4_i32 : i32 to vector<8x1xi32>
    %19 = arith.cmpi sgt, %1, %18 : vector<8x1xi32>
    %20 = arith.extui %19 : vector<8x1xi1> to vector<8x1xi32>
    %21 = arith.sitofp %20 : vector<8x1xi32> to vector<8x1xf32>
    %c5_i32 = arith.constant 5 : i32
    %22 = vector.broadcast %c5_i32 : i32 to vector<8x1xi32>
    %23 = arith.cmpi sgt, %1, %22 : vector<8x1xi32>
    %24 = arith.extui %23 : vector<8x1xi1> to vector<8x1xi32>
    %25 = arith.sitofp %24 : vector<8x1xi32> to vector<8x1xf32>
    %c6_i32 = arith.constant 6 : i32
    %26 = vector.broadcast %c6_i32 : i32 to vector<8x1xi32>
    %27 = arith.cmpi sgt, %1, %26 : vector<8x1xi32>
    %28 = arith.extui %27 : vector<8x1xi1> to vector<8x1xi32>
    %29 = arith.sitofp %28 : vector<8x1xi32> to vector<8x1xf32>
    %c7_i32 = arith.constant 7 : i32
    %30 = vector.broadcast %c7_i32 : i32 to vector<8x1xi32>
    %31 = arith.cmpi sgt, %1, %30 : vector<8x1xi32>
    %32 = arith.extui %31 : vector<8x1xi1> to vector<8x1xi32>
    %33 = arith.sitofp %32 : vector<8x1xi32> to vector<8x1xf32>
    %c0_2 = arith.constant 0 : index
    %c0_3 = arith.constant 0 : index
    %34 = vector.load %arg4[%c0_2, %c0_3] : memref<2x128xf32, #tpu.memory_space<vmem>>, vector<1x96xf32>
    %c1 = arith.constant 1 : index
    %c0_4 = arith.constant 0 : index
    %35 = vector.load %arg4[%c1, %c0_4] : memref<2x128xf32, #tpu.memory_space<vmem>>, vector<1x96xf32>
    %c0_5 = arith.constant 0 : index
    %c96 = arith.constant 96 : index
    %36 = vector.load %arg4[%c0_5, %c96] : memref<2x128xf32, #tpu.memory_space<vmem>>, vector<1x32xf32>
    %c1_6 = arith.constant 1 : index
    %c96_7 = arith.constant 96 : index
    %37 = vector.load %arg4[%c1_6, %c96_7] : memref<2x128xf32, #tpu.memory_space<vmem>>, vector<1x32xf32>
    %38 = tpu.iota {dimensions = array<i32: 1>} : vector<64x64xi32>
    %39 = vector.broadcast %0 : vector<64x1xi32> to vector<64x64xi32>
    %40 = arith.cmpi eq, %39, %38 : vector<64x64xi32>
    %41 = arith.extui %40 : vector<64x64xi1> to vector<64x64xi32>
    %42 = arith.sitofp %41 : vector<64x64xi32> to vector<64x64xf32>
    %43 = arith.truncf %42 : vector<64x64xf32> to vector<64x64xbf16>
    %c0_8 = arith.constant 0 : index
    %c0_9 = arith.constant 0 : index
    %44 = vector.load %arg2[%c0_8, %c0_9] : memref<64x96xbf16, #tpu.memory_space<vmem>>, vector<64x96xbf16>
    %cst = arith.constant dense<0.000000e+00> : vector<64x96xf32>
    %45 = tpu.matmul %43, %44, %cst {dimension_numbers = #tpu.dot_dimension_numbers<[1], [0], [0], [1], [0, 0, 1, 1], [], []>} : vector<64x64xbf16>, vector<64x96xbf16>, vector<64x96xf32> -> vector<64x96xf32>
    %46 = vector.broadcast %34 : vector<1x96xf32> to vector<64x96xf32>
    %47 = arith.addf %45, %46 : vector<64x96xf32>
    %c0_10 = arith.constant 0 : index
    %c0_11 = arith.constant 0 : index
    %48 = vector.load %arg3[%c0_10, %c0_11] : memref<96x288xbf16, #tpu.memory_space<vmem>>, vector<96x288xbf16>
    %cst_12 = arith.constant 0.000000e+00 : f32
    %49 = vector.broadcast %cst_12 : f32 to vector<8x32xf32>
    %50 = vector.extract_strided_slice %47 {offsets = [0, 0], sizes = [8, 96], strides = [1, 1]} : vector<64x96xf32> to vector<8x96xf32>
    %cst_13 = arith.constant 0.000000e+00 : f32
    %51 = vector.broadcast %cst_13 : f32 to vector<8x96xf32>
    %52 = arith.addf %50, %51 : vector<8x96xf32>
    %53 = vector.extract_strided_slice %52 {offsets = [0, 0], sizes = [8, 64], strides = [1, 1]} : vector<8x96xf32> to vector<8x64xf32>
    %54 = arith.negf %53 : vector<8x64xf32>
    %55 = math.exp %54 : vector<8x64xf32>
    %cst_14 = arith.constant 1.000000e+00 : f32
    %56 = vector.broadcast %cst_14 : f32 to vector<8x64xf32>
    %57 = arith.addf %56, %55 : vector<8x64xf32>
    %58 = arith.divf %56, %57 : vector<8x64xf32>
    %59 = vector.extract_strided_slice %58 {offsets = [0, 0], sizes = [8, 32], strides = [1, 1]} : vector<8x64xf32> to vector<8x32xf32>
    %60 = vector.extract_strided_slice %58 {offsets = [0, 32], sizes = [8, 32], strides = [1, 1]} : vector<8x64xf32> to vector<8x32xf32>
    %61 = vector.extract_strided_slice %50 {offsets = [0, 64], sizes = [8, 32], strides = [1, 1]} : vector<8x96xf32> to vector<8x32xf32>
    %62 = vector.extract_strided_slice %51 {offsets = [0, 64], sizes = [8, 32], strides = [1, 1]} : vector<8x96xf32> to vector<8x32xf32>
    %63 = vector.broadcast %36 : vector<1x32xf32> to vector<8x32xf32>
    %64 = arith.addf %62, %63 : vector<8x32xf32>
    %65 = arith.mulf %59, %64 : vector<8x32xf32>
    %66 = arith.addf %61, %65 : vector<8x32xf32>
    %67 = math.tanh %66 : vector<8x32xf32>
    %cst_15 = arith.constant 1.000000e+00 : f32
    %68 = vector.broadcast %cst_15 : f32 to vector<8x32xf32>
    %69 = arith.subf %68, %60 : vector<8x32xf32>
    %70 = arith.mulf %69, %67 : vector<8x32xf32>
    %71 = arith.mulf %60, %49 : vector<8x32xf32>
    %72 = arith.addf %70, %71 : vector<8x32xf32>
    %73 = vector.broadcast %5 : vector<8x1xf32> to vector<8x32xf32>
    %74 = arith.mulf %73, %72 : vector<8x32xf32>
    %75 = arith.subf %72, %49 : vector<8x32xf32>
    %76 = vector.broadcast %5 : vector<8x1xf32> to vector<8x32xf32>
    %77 = arith.mulf %76, %75 : vector<8x32xf32>
    %78 = arith.addf %49, %77 : vector<8x32xf32>
    %79 = tpu.concatenate %78, %49, %74 in 1 : vector<8x32xf32>, vector<8x32xf32>, vector<8x32xf32> -> vector<8x96xf32>
    %80 = arith.truncf %79 : vector<8x96xf32> to vector<8x96xbf16>
    %cst_16 = arith.constant dense<0.000000e+00> : vector<8x288xf32>
    %81 = tpu.matmul %80, %48, %cst_16 {dimension_numbers = #tpu.dot_dimension_numbers<[1], [0], [0], [1], [0, 0, 1, 1], [], []>} : vector<8x96xbf16>, vector<96x288xbf16>, vector<8x288xf32> -> vector<8x288xf32>
    %82 = vector.extract_strided_slice %81 {offsets = [0, 96], sizes = [8, 96], strides = [1, 1]} : vector<8x288xf32> to vector<8x96xf32>
    %83 = vector.extract_strided_slice %81 {offsets = [0, 192], sizes = [8, 96], strides = [1, 1]} : vector<8x288xf32> to vector<8x96xf32>
    %84 = vector.broadcast %35 : vector<1x96xf32> to vector<8x96xf32>
    %85 = arith.addf %83, %84 : vector<8x96xf32>
    %86 = arith.addf %85, %82 : vector<8x96xf32>
    %87 = vector.extract_strided_slice %86 {offsets = [0, 0], sizes = [8, 64], strides = [1, 1]} : vector<8x96xf32> to vector<8x64xf32>
    %88 = arith.negf %87 : vector<8x64xf32>
    %89 = math.exp %88 : vector<8x64xf32>
    %cst_17 = arith.constant 1.000000e+00 : f32
    %90 = vector.broadcast %cst_17 : f32 to vector<8x64xf32>
    %91 = arith.addf %90, %89 : vector<8x64xf32>
    %92 = arith.divf %90, %91 : vector<8x64xf32>
    %93 = vector.extract_strided_slice %92 {offsets = [0, 0], sizes = [8, 32], strides = [1, 1]} : vector<8x64xf32> to vector<8x32xf32>
    %94 = vector.extract_strided_slice %92 {offsets = [0, 32], sizes = [8, 32], strides = [1, 1]} : vector<8x64xf32> to vector<8x32xf32>
    %95 = vector.extract_strided_slice %85 {offsets = [0, 64], sizes = [8, 32], strides = [1, 1]} : vector<8x96xf32> to vector<8x32xf32>
    %96 = vector.extract_strided_slice %82 {offsets = [0, 64], sizes = [8, 32], strides = [1, 1]} : vector<8x96xf32> to vector<8x32xf32>
    %97 = vector.broadcast %37 : vector<1x32xf32> to vector<8x32xf32>
    %98 = arith.addf %96, %97 : vector<8x32xf32>
    %99 = arith.mulf %93, %98 : vector<8x32xf32>
    %100 = arith.addf %95, %99 : vector<8x32xf32>
    %101 = math.tanh %100 : vector<8x32xf32>
    %cst_18 = arith.constant 1.000000e+00 : f32
    %102 = vector.broadcast %cst_18 : f32 to vector<8x32xf32>
    %103 = arith.subf %102, %94 : vector<8x32xf32>
    %104 = arith.mulf %103, %101 : vector<8x32xf32>
    %105 = arith.mulf %94, %49 : vector<8x32xf32>
    %106 = arith.addf %104, %105 : vector<8x32xf32>
    %107 = vector.broadcast %5 : vector<8x1xf32> to vector<8x32xf32>
    %108 = arith.mulf %107, %106 : vector<8x32xf32>
    %c0_19 = arith.constant 0 : index
    %c0_20 = arith.constant 0 : index
    %109 = vector.load %arg5[%c0_19, %c0_20] : memref<8x320xf32, #tpu.memory_space<vmem>>, vector<8x32xf32>
    tpu.vector_store %arg5[%c0_19, %c0_20], %108 {strides = array<i32>} : memref<8x320xf32, #tpu.memory_space<vmem>>, vector<8x32xf32>,
    %110 = arith.subf %106, %49 : vector<8x32xf32>
    %111 = vector.broadcast %5 : vector<8x1xf32> to vector<8x32xf32>
    %112 = arith.mulf %111, %110 : vector<8x32xf32>
    %113 = arith.addf %49, %112 : vector<8x32xf32>
    %114 = vector.extract_strided_slice %81 {offsets = [0, 0], sizes = [8, 96], strides = [1, 1]} : vector<8x288xf32> to vector<8x96xf32>
    %115 = vector.extract_strided_slice %47 {offsets = [8, 0], sizes = [8, 96], strides = [1, 1]} : vector<64x96xf32> to vector<8x96xf32>
    %116 = arith.addf %115, %114 : vector<8x96xf32>
    %117 = vector.extract_strided_slice %116 {offsets = [0, 0], sizes = [8, 64], strides = [1, 1]} : vector<8x96xf32> to vector<8x64xf32>
    %118 = arith.negf %117 : vector<8x64xf32>
    %119 = math.exp %118 : vector<8x64xf32>
    %cst_21 = arith.constant 1.000000e+00 : f32
    %120 = vector.broadcast %cst_21 : f32 to vector<8x64xf32>
    %121 = arith.addf %120, %119 : vector<8x64xf32>
    %122 = arith.divf %120, %121 : vector<8x64xf32>
    %123 = vector.extract_strided_slice %122 {offsets = [0, 0], sizes = [8, 32], strides = [1, 1]} : vector<8x64xf32> to vector<8x32xf32>
    %124 = vector.extract_strided_slice %122 {offsets = [0, 32], sizes = [8, 32], strides = [1, 1]} : vector<8x64xf32> to vector<8x32xf32>
    %125 = vector.extract_strided_slice %115 {offsets = [0, 64], sizes = [8, 32], strides = [1, 1]} : vector<8x96xf32> to vector<8x32xf32>
    %126 = vector.extract_strided_slice %114 {offsets = [0, 64], sizes = [8, 32], strides = [1, 1]} : vector<8x96xf32> to vector<8x32xf32>
    %127 = vector.broadcast %36 : vector<1x32xf32> to vector<8x32xf32>
    %128 = arith.addf %126, %127 : vector<8x32xf32>
    %129 = arith.mulf %123, %128 : vector<8x32xf32>
    %130 = arith.addf %125, %129 : vector<8x32xf32>
    %131 = math.tanh %130 : vector<8x32xf32>
    %cst_22 = arith.constant 1.000000e+00 : f32
    %132 = vector.broadcast %cst_22 : f32 to vector<8x32xf32>
    %133 = arith.subf %132, %124 : vector<8x32xf32>
    %134 = arith.mulf %133, %131 : vector<8x32xf32>
    %135 = arith.mulf %124, %78 : vector<8x32xf32>
    %136 = arith.addf %134, %135 : vector<8x32xf32>
    %137 = vector.broadcast %9 : vector<8x1xf32> to vector<8x32xf32>
    %138 = arith.mulf %137, %136 : vector<8x32xf32>
    %139 = arith.subf %136, %78 : vector<8x32xf32>
    %140 = vector.broadcast %9 : vector<8x1xf32> to vector<8x32xf32>
    %141 = arith.mulf %140, %139 : vector<8x32xf32>
    %142 = arith.addf %78, %141 : vector<8x32xf32>
    %143 = tpu.concatenate %142, %113, %138 in 1 : vector<8x32xf32>, vector<8x32xf32>, vector<8x32xf32> -> vector<8x96xf32>
    %144 = arith.truncf %143 : vector<8x96xf32> to vector<8x96xbf16>
    %cst_23 = arith.constant dense<0.000000e+00> : vector<8x288xf32>
    %145 = tpu.matmul %144, %48, %cst_23 {dimension_numbers = #tpu.dot_dimension_numbers<[1], [0], [0], [1], [0, 0, 1, 1], [], []>} : vector<8x96xbf16>, vector<96x288xbf16>, vector<8x288xf32> -> vector<8x288xf32>
    %146 = vector.extract_strided_slice %145 {offsets = [0, 96], sizes = [8, 96], strides = [1, 1]} : vector<8x288xf32> to vector<8x96xf32>
    %147 = vector.extract_strided_slice %145 {offsets = [0, 192], sizes = [8, 96], strides = [1, 1]} : vector<8x288xf32> to vector<8x96xf32>
    %148 = vector.broadcast %35 : vector<1x96xf32> to vector<8x96xf32>
    %149 = arith.addf %147, %148 : vector<8x96xf32>
    %150 = arith.addf %149, %146 : vector<8x96xf32>
    %151 = vector.extract_strided_slice %150 {offsets = [0, 0], sizes = [8, 64], strides = [1, 1]} : vector<8x96xf32> to vector<8x64xf32>
    %152 = arith.negf %151 : vector<8x64xf32>
    %153 = math.exp %152 : vector<8x64xf32>
    %cst_24 = arith.constant 1.000000e+00 : f32
    %154 = vector.broadcast %cst_24 : f32 to vector<8x64xf32>
    %155 = arith.addf %154, %153 : vector<8x64xf32>
    %156 = arith.divf %154, %155 : vector<8x64xf32>
    %157 = vector.extract_strided_slice %156 {offsets = [0, 0], sizes = [8, 32], strides = [1, 1]} : vector<8x64xf32> to vector<8x32xf32>
    %158 = vector.extract_strided_slice %156 {offsets = [0, 32], sizes = [8, 32], strides = [1, 1]} : vector<8x64xf32> to vector<8x32xf32>
    %159 = vector.extract_strided_slice %149 {offsets = [0, 64], sizes = [8, 32], strides = [1, 1]} : vector<8x96xf32> to vector<8x32xf32>
    %160 = vector.extract_strided_slice %146 {offsets = [0, 64], sizes = [8, 32], strides = [1, 1]} : vector<8x96xf32> to vector<8x32xf32>
    %161 = vector.broadcast %37 : vector<1x32xf32> to vector<8x32xf32>
    %162 = arith.addf %160, %161 : vector<8x32xf32>
    %163 = arith.mulf %157, %162 : vector<8x32xf32>
    %164 = arith.addf %159, %163 : vector<8x32xf32>
    %165 = math.tanh %164 : vector<8x32xf32>
    %cst_25 = arith.constant 1.000000e+00 : f32
    %166 = vector.broadcast %cst_25 : f32 to vector<8x32xf32>
    %167 = arith.subf %166, %158 : vector<8x32xf32>
    %168 = arith.mulf %167, %165 : vector<8x32xf32>
    %169 = arith.mulf %158, %113 : vector<8x32xf32>
    %170 = arith.addf %168, %169 : vector<8x32xf32>
    %171 = vector.broadcast %9 : vector<8x1xf32> to vector<8x32xf32>
    %172 = arith.mulf %171, %170 : vector<8x32xf32>
    %c0_26 = arith.constant 0 : index
    %c32 = arith.constant 32 : index
    %173 = vector.load %arg5[%c0_26, %c32] : memref<8x320xf32, #tpu.memory_space<vmem>>, vector<8x32xf32>
    tpu.vector_store %arg5[%c0_26, %c32], %172 {strides = array<i32>} : memref<8x320xf32, #tpu.memory_space<vmem>>, vector<8x32xf32>,
    %174 = arith.subf %170, %113 : vector<8x32xf32>
    %175 = vector.broadcast %9 : vector<8x1xf32> to vector<8x32xf32>
    %176 = arith.mulf %175, %174 : vector<8x32xf32>
    %177 = arith.addf %113, %176 : vector<8x32xf32>
    %178 = vector.extract_strided_slice %145 {offsets = [0, 0], sizes = [8, 96], strides = [1, 1]} : vector<8x288xf32> to vector<8x96xf32>
    %179 = vector.extract_strided_slice %47 {offsets = [16, 0], sizes = [8, 96], strides = [1, 1]} : vector<64x96xf32> to vector<8x96xf32>
    %180 = arith.addf %179, %178 : vector<8x96xf32>
    %181 = vector.extract_strided_slice %180 {offsets = [0, 0], sizes = [8, 64], strides = [1, 1]} : vector<8x96xf32> to vector<8x64xf32>
    %182 = arith.negf %181 : vector<8x64xf32>
    %183 = math.exp %182 : vector<8x64xf32>
    %cst_27 = arith.constant 1.000000e+00 : f32
    %184 = vector.broadcast %cst_27 : f32 to vector<8x64xf32>
    %185 = arith.addf %184, %183 : vector<8x64xf32>
    %186 = arith.divf %184, %185 : vector<8x64xf32>
    %187 = vector.extract_strided_slice %186 {offsets = [0, 0], sizes = [8, 32], strides = [1, 1]} : vector<8x64xf32> to vector<8x32xf32>
    %188 = vector.extract_strided_slice %186 {offsets = [0, 32], sizes = [8, 32], strides = [1, 1]} : vector<8x64xf32> to vector<8x32xf32>
    %189 = vector.extract_strided_slice %179 {offsets = [0, 64], sizes = [8, 32], strides = [1, 1]} : vector<8x96xf32> to vector<8x32xf32>
    %190 = vector.extract_strided_slice %178 {offsets = [0, 64], sizes = [8, 32], strides = [1, 1]} : vector<8x96xf32> to vector<8x32xf32>
    %191 = vector.broadcast %36 : vector<1x32xf32> to vector<8x32xf32>
    %192 = arith.addf %190, %191 : vector<8x32xf32>
    %193 = arith.mulf %187, %192 : vector<8x32xf32>
    %194 = arith.addf %189, %193 : vector<8x32xf32>
    %195 = math.tanh %194 : vector<8x32xf32>
    %cst_28 = arith.constant 1.000000e+00 : f32
    %196 = vector.broadcast %cst_28 : f32 to vector<8x32xf32>
    %197 = arith.subf %196, %188 : vector<8x32xf32>
    %198 = arith.mulf %197, %195 : vector<8x32xf32>
    %199 = arith.mulf %188, %142 : vector<8x32xf32>
    %200 = arith.addf %198, %199 : vector<8x32xf32>
    %201 = vector.broadcast %13 : vector<8x1xf32> to vector<8x32xf32>
    %202 = arith.mulf %201, %200 : vector<8x32xf32>
    %203 = arith.subf %200, %142 : vector<8x32xf32>
    %204 = vector.broadcast %13 : vector<8x1xf32> to vector<8x32xf32>
    %205 = arith.mulf %204, %203 : vector<8x32xf32>
    %206 = arith.addf %142, %205 : vector<8x32xf32>
    %207 = tpu.concatenate %206, %177, %202 in 1 : vector<8x32xf32>, vector<8x32xf32>, vector<8x32xf32> -> vector<8x96xf32>
    %208 = arith.truncf %207 : vector<8x96xf32> to vector<8x96xbf16>
    %cst_29 = arith.constant dense<0.000000e+00> : vector<8x288xf32>
    %209 = tpu.matmul %208, %48, %cst_29 {dimension_numbers = #tpu.dot_dimension_numbers<[1], [0], [0], [1], [0, 0, 1, 1], [], []>} : vector<8x96xbf16>, vector<96x288xbf16>, vector<8x288xf32> -> vector<8x288xf32>
    %210 = vector.extract_strided_slice %209 {offsets = [0, 96], sizes = [8, 96], strides = [1, 1]} : vector<8x288xf32> to vector<8x96xf32>
    %211 = vector.extract_strided_slice %209 {offsets = [0, 192], sizes = [8, 96], strides = [1, 1]} : vector<8x288xf32> to vector<8x96xf32>
    %212 = vector.broadcast %35 : vector<1x96xf32> to vector<8x96xf32>
    %213 = arith.addf %211, %212 : vector<8x96xf32>
    %214 = arith.addf %213, %210 : vector<8x96xf32>
    %215 = vector.extract_strided_slice %214 {offsets = [0, 0], sizes = [8, 64], strides = [1, 1]} : vector<8x96xf32> to vector<8x64xf32>
    %216 = arith.negf %215 : vector<8x64xf32>
    %217 = math.exp %216 : vector<8x64xf32>
    %cst_30 = arith.constant 1.000000e+00 : f32
    %218 = vector.broadcast %cst_30 : f32 to vector<8x64xf32>
    %219 = arith.addf %218, %217 : vector<8x64xf32>
    %220 = arith.divf %218, %219 : vector<8x64xf32>
    %221 = vector.extract_strided_slice %220 {offsets = [0, 0], sizes = [8, 32], strides = [1, 1]} : vector<8x64xf32> to vector<8x32xf32>
    %222 = vector.extract_strided_slice %220 {offsets = [0, 32], sizes = [8, 32], strides = [1, 1]} : vector<8x64xf32> to vector<8x32xf32>
    %223 = vector.extract_strided_slice %213 {offsets = [0, 64], sizes = [8, 32], strides = [1, 1]} : vector<8x96xf32> to vector<8x32xf32>
    %224 = vector.extract_strided_slice %210 {offsets = [0, 64], sizes = [8, 32], strides = [1, 1]} : vector<8x96xf32> to vector<8x32xf32>
    %225 = vector.broadcast %37 : vector<1x32xf32> to vector<8x32xf32>
    %226 = arith.addf %224, %225 : vector<8x32xf32>
    %227 = arith.mulf %221, %226 : vector<8x32xf32>
    %228 = arith.addf %223, %227 : vector<8x32xf32>
    %229 = math.tanh %228 : vector<8x32xf32>
    %cst_31 = arith.constant 1.000000e+00 : f32
    %230 = vector.broadcast %cst_31 : f32 to vector<8x32xf32>
    %231 = arith.subf %230, %222 : vector<8x32xf32>
    %232 = arith.mulf %231, %229 : vector<8x32xf32>
    %233 = arith.mulf %222, %177 : vector<8x32xf32>
    %234 = arith.addf %232, %233 : vector<8x32xf32>
    %235 = vector.broadcast %13 : vector<8x1xf32> to vector<8x32xf32>
    %236 = arith.mulf %235, %234 : vector<8x32xf32>
    %c0_32 = arith.constant 0 : index
    %c64_33 = arith.constant 64 : index
    %237 = vector.load %arg5[%c0_32, %c64_33] : memref<8x320xf32, #tpu.memory_space<vmem>>, vector<8x32xf32>
    tpu.vector_store %arg5[%c0_32, %c64_33], %236 {strides = array<i32>} : memref<8x320xf32, #tpu.memory_space<vmem>>, vector<8x32xf32>,
    %238 = arith.subf %234, %177 : vector<8x32xf32>
    %239 = vector.broadcast %13 : vector<8x1xf32> to vector<8x32xf32>
    %240 = arith.mulf %239, %238 : vector<8x32xf32>
    %241 = arith.addf %177, %240 : vector<8x32xf32>
    %242 = vector.extract_strided_slice %209 {offsets = [0, 0], sizes = [8, 96], strides = [1, 1]} : vector<8x288xf32> to vector<8x96xf32>
    %243 = vector.extract_strided_slice %47 {offsets = [24, 0], sizes = [8, 96], strides = [1, 1]} : vector<64x96xf32> to vector<8x96xf32>
    %244 = arith.addf %243, %242 : vector<8x96xf32>
    %245 = vector.extract_strided_slice %244 {offsets = [0, 0], sizes = [8, 64], strides = [1, 1]} : vector<8x96xf32> to vector<8x64xf32>
    %246 = arith.negf %245 : vector<8x64xf32>
    %247 = math.exp %246 : vector<8x64xf32>
    %cst_34 = arith.constant 1.000000e+00 : f32
    %248 = vector.broadcast %cst_34 : f32 to vector<8x64xf32>
    %249 = arith.addf %248, %247 : vector<8x64xf32>
    %250 = arith.divf %248, %249 : vector<8x64xf32>
    %251 = vector.extract_strided_slice %250 {offsets = [0, 0], sizes = [8, 32], strides = [1, 1]} : vector<8x64xf32> to vector<8x32xf32>
    %252 = vector.extract_strided_slice %250 {offsets = [0, 32], sizes = [8, 32], strides = [1, 1]} : vector<8x64xf32> to vector<8x32xf32>
    %253 = vector.extract_strided_slice %243 {offsets = [0, 64], sizes = [8, 32], strides = [1, 1]} : vector<8x96xf32> to vector<8x32xf32>
    %254 = vector.extract_strided_slice %242 {offsets = [0, 64], sizes = [8, 32], strides = [1, 1]} : vector<8x96xf32> to vector<8x32xf32>
    %255 = vector.broadcast %36 : vector<1x32xf32> to vector<8x32xf32>
    %256 = arith.addf %254, %255 : vector<8x32xf32>
    %257 = arith.mulf %251, %256 : vector<8x32xf32>
    %258 = arith.addf %253, %257 : vector<8x32xf32>
    %259 = math.tanh %258 : vector<8x32xf32>
    %cst_35 = arith.constant 1.000000e+00 : f32
    %260 = vector.broadcast %cst_35 : f32 to vector<8x32xf32>
    %261 = arith.subf %260, %252 : vector<8x32xf32>
    %262 = arith.mulf %261, %259 : vector<8x32xf32>
    %263 = arith.mulf %252, %206 : vector<8x32xf32>
    %264 = arith.addf %262, %263 : vector<8x32xf32>
    %265 = vector.broadcast %17 : vector<8x1xf32> to vector<8x32xf32>
    %266 = arith.mulf %265, %264 : vector<8x32xf32>
    %267 = arith.subf %264, %206 : vector<8x32xf32>
    %268 = vector.broadcast %17 : vector<8x1xf32> to vector<8x32xf32>
    %269 = arith.mulf %268, %267 : vector<8x32xf32>
    %270 = arith.addf %206, %269 : vector<8x32xf32>
    %271 = tpu.concatenate %270, %241, %266 in 1 : vector<8x32xf32>, vector<8x32xf32>, vector<8x32xf32> -> vector<8x96xf32>
    %272 = arith.truncf %271 : vector<8x96xf32> to vector<8x96xbf16>
    %cst_36 = arith.constant dense<0.000000e+00> : vector<8x288xf32>
    %273 = tpu.matmul %272, %48, %cst_36 {dimension_numbers = #tpu.dot_dimension_numbers<[1], [0], [0], [1], [0, 0, 1, 1], [], []>} : vector<8x96xbf16>, vector<96x288xbf16>, vector<8x288xf32> -> vector<8x288xf32>
    %274 = vector.extract_strided_slice %273 {offsets = [0, 96], sizes = [8, 96], strides = [1, 1]} : vector<8x288xf32> to vector<8x96xf32>
    %275 = vector.extract_strided_slice %273 {offsets = [0, 192], sizes = [8, 96], strides = [1, 1]} : vector<8x288xf32> to vector<8x96xf32>
    %276 = vector.broadcast %35 : vector<1x96xf32> to vector<8x96xf32>
    %277 = arith.addf %275, %276 : vector<8x96xf32>
    %278 = arith.addf %277, %274 : vector<8x96xf32>
    %279 = vector.extract_strided_slice %278 {offsets = [0, 0], sizes = [8, 64], strides = [1, 1]} : vector<8x96xf32> to vector<8x64xf32>
    %280 = arith.negf %279 : vector<8x64xf32>
    %281 = math.exp %280 : vector<8x64xf32>
    %cst_37 = arith.constant 1.000000e+00 : f32
    %282 = vector.broadcast %cst_37 : f32 to vector<8x64xf32>
    %283 = arith.addf %282, %281 : vector<8x64xf32>
    %284 = arith.divf %282, %283 : vector<8x64xf32>
    %285 = vector.extract_strided_slice %284 {offsets = [0, 0], sizes = [8, 32], strides = [1, 1]} : vector<8x64xf32> to vector<8x32xf32>
    %286 = vector.extract_strided_slice %284 {offsets = [0, 32], sizes = [8, 32], strides = [1, 1]} : vector<8x64xf32> to vector<8x32xf32>
    %287 = vector.extract_strided_slice %277 {offsets = [0, 64], sizes = [8, 32], strides = [1, 1]} : vector<8x96xf32> to vector<8x32xf32>
    %288 = vector.extract_strided_slice %274 {offsets = [0, 64], sizes = [8, 32], strides = [1, 1]} : vector<8x96xf32> to vector<8x32xf32>
    %289 = vector.broadcast %37 : vector<1x32xf32> to vector<8x32xf32>
    %290 = arith.addf %288, %289 : vector<8x32xf32>
    %291 = arith.mulf %285, %290 : vector<8x32xf32>
    %292 = arith.addf %287, %291 : vector<8x32xf32>
    %293 = math.tanh %292 : vector<8x32xf32>
    %cst_38 = arith.constant 1.000000e+00 : f32
    %294 = vector.broadcast %cst_38 : f32 to vector<8x32xf32>
    %295 = arith.subf %294, %286 : vector<8x32xf32>
    %296 = arith.mulf %295, %293 : vector<8x32xf32>
    %297 = arith.mulf %286, %241 : vector<8x32xf32>
    %298 = arith.addf %296, %297 : vector<8x32xf32>
    %299 = vector.broadcast %17 : vector<8x1xf32> to vector<8x32xf32>
    %300 = arith.mulf %299, %298 : vector<8x32xf32>
    %c0_39 = arith.constant 0 : index
    %c96_40 = arith.constant 96 : index
    %301 = vector.load %arg5[%c0_39, %c96_40] : memref<8x320xf32, #tpu.memory_space<vmem>>, vector<8x32xf32>
    tpu.vector_store %arg5[%c0_39, %c96_40], %300 {strides = array<i32>} : memref<8x320xf32, #tpu.memory_space<vmem>>, vector<8x32xf32>,
    %302 = arith.subf %298, %241 : vector<8x32xf32>
    %303 = vector.broadcast %17 : vector<8x1xf32> to vector<8x32xf32>
    %304 = arith.mulf %303, %302 : vector<8x32xf32>
    %305 = arith.addf %241, %304 : vector<8x32xf32>
    %306 = vector.extract_strided_slice %273 {offsets = [0, 0], sizes = [8, 96], strides = [1, 1]} : vector<8x288xf32> to vector<8x96xf32>
    %307 = vector.extract_strided_slice %47 {offsets = [32, 0], sizes = [8, 96], strides = [1, 1]} : vector<64x96xf32> to vector<8x96xf32>
    %308 = arith.addf %307, %306 : vector<8x96xf32>
    %309 = vector.extract_strided_slice %308 {offsets = [0, 0], sizes = [8, 64], strides = [1, 1]} : vector<8x96xf32> to vector<8x64xf32>
    %310 = arith.negf %309 : vector<8x64xf32>
    %311 = math.exp %310 : vector<8x64xf32>
    %cst_41 = arith.constant 1.000000e+00 : f32
    %312 = vector.broadcast %cst_41 : f32 to vector<8x64xf32>
    %313 = arith.addf %312, %311 : vector<8x64xf32>
    %314 = arith.divf %312, %313 : vector<8x64xf32>
    %315 = vector.extract_strided_slice %314 {offsets = [0, 0], sizes = [8, 32], strides = [1, 1]} : vector<8x64xf32> to vector<8x32xf32>
    %316 = vector.extract_strided_slice %314 {offsets = [0, 32], sizes = [8, 32], strides = [1, 1]} : vector<8x64xf32> to vector<8x32xf32>
    %317 = vector.extract_strided_slice %307 {offsets = [0, 64], sizes = [8, 32], strides = [1, 1]} : vector<8x96xf32> to vector<8x32xf32>
    %318 = vector.extract_strided_slice %306 {offsets = [0, 64], sizes = [8, 32], strides = [1, 1]} : vector<8x96xf32> to vector<8x32xf32>
    %319 = vector.broadcast %36 : vector<1x32xf32> to vector<8x32xf32>
    %320 = arith.addf %318, %319 : vector<8x32xf32>
    %321 = arith.mulf %315, %320 : vector<8x32xf32>
    %322 = arith.addf %317, %321 : vector<8x32xf32>
    %323 = math.tanh %322 : vector<8x32xf32>
    %cst_42 = arith.constant 1.000000e+00 : f32
    %324 = vector.broadcast %cst_42 : f32 to vector<8x32xf32>
    %325 = arith.subf %324, %316 : vector<8x32xf32>
    %326 = arith.mulf %325, %323 : vector<8x32xf32>
    %327 = arith.mulf %316, %270 : vector<8x32xf32>
    %328 = arith.addf %326, %327 : vector<8x32xf32>
    %329 = vector.broadcast %21 : vector<8x1xf32> to vector<8x32xf32>
    %330 = arith.mulf %329, %328 : vector<8x32xf32>
    %331 = arith.subf %328, %270 : vector<8x32xf32>
    %332 = vector.broadcast %21 : vector<8x1xf32> to vector<8x32xf32>
    %333 = arith.mulf %332, %331 : vector<8x32xf32>
    %334 = arith.addf %270, %333 : vector<8x32xf32>
    %335 = tpu.concatenate %334, %305, %330 in 1 : vector<8x32xf32>, vector<8x32xf32>, vector<8x32xf32> -> vector<8x96xf32>
    %336 = arith.truncf %335 : vector<8x96xf32> to vector<8x96xbf16>
    %cst_43 = arith.constant dense<0.000000e+00> : vector<8x288xf32>
    %337 = tpu.matmul %336, %48, %cst_43 {dimension_numbers = #tpu.dot_dimension_numbers<[1], [0], [0], [1], [0, 0, 1, 1], [], []>} : vector<8x96xbf16>, vector<96x288xbf16>, vector<8x288xf32> -> vector<8x288xf32>
    %338 = vector.extract_strided_slice %337 {offsets = [0, 96], sizes = [8, 96], strides = [1, 1]} : vector<8x288xf32> to vector<8x96xf32>
    %339 = vector.extract_strided_slice %337 {offsets = [0, 192], sizes = [8, 96], strides = [1, 1]} : vector<8x288xf32> to vector<8x96xf32>
    %340 = vector.broadcast %35 : vector<1x96xf32> to vector<8x96xf32>
    %341 = arith.addf %339, %340 : vector<8x96xf32>
    %342 = arith.addf %341, %338 : vector<8x96xf32>
    %343 = vector.extract_strided_slice %342 {offsets = [0, 0], sizes = [8, 64], strides = [1, 1]} : vector<8x96xf32> to vector<8x64xf32>
    %344 = arith.negf %343 : vector<8x64xf32>
    %345 = math.exp %344 : vector<8x64xf32>
    %cst_44 = arith.constant 1.000000e+00 : f32
    %346 = vector.broadcast %cst_44 : f32 to vector<8x64xf32>
    %347 = arith.addf %346, %345 : vector<8x64xf32>
    %348 = arith.divf %346, %347 : vector<8x64xf32>
    %349 = vector.extract_strided_slice %348 {offsets = [0, 0], sizes = [8, 32], strides = [1, 1]} : vector<8x64xf32> to vector<8x32xf32>
    %350 = vector.extract_strided_slice %348 {offsets = [0, 32], sizes = [8, 32], strides = [1, 1]} : vector<8x64xf32> to vector<8x32xf32>
    %351 = vector.extract_strided_slice %341 {offsets = [0, 64], sizes = [8, 32], strides = [1, 1]} : vector<8x96xf32> to vector<8x32xf32>
    %352 = vector.extract_strided_slice %338 {offsets = [0, 64], sizes = [8, 32], strides = [1, 1]} : vector<8x96xf32> to vector<8x32xf32>
    %353 = vector.broadcast %37 : vector<1x32xf32> to vector<8x32xf32>
    %354 = arith.addf %352, %353 : vector<8x32xf32>
    %355 = arith.mulf %349, %354 : vector<8x32xf32>
    %356 = arith.addf %351, %355 : vector<8x32xf32>
    %357 = math.tanh %356 : vector<8x32xf32>
    %cst_45 = arith.constant 1.000000e+00 : f32
    %358 = vector.broadcast %cst_45 : f32 to vector<8x32xf32>
    %359 = arith.subf %358, %350 : vector<8x32xf32>
    %360 = arith.mulf %359, %357 : vector<8x32xf32>
    %361 = arith.mulf %350, %305 : vector<8x32xf32>
    %362 = arith.addf %360, %361 : vector<8x32xf32>
    %363 = vector.broadcast %21 : vector<8x1xf32> to vector<8x32xf32>
    %364 = arith.mulf %363, %362 : vector<8x32xf32>
    %c0_46 = arith.constant 0 : index
    %c128 = arith.constant 128 : index
    %365 = vector.load %arg5[%c0_46, %c128] : memref<8x320xf32, #tpu.memory_space<vmem>>, vector<8x32xf32>
    tpu.vector_store %arg5[%c0_46, %c128], %364 {strides = array<i32>} : memref<8x320xf32, #tpu.memory_space<vmem>>, vector<8x32xf32>,
    %366 = arith.subf %362, %305 : vector<8x32xf32>
    %367 = vector.broadcast %21 : vector<8x1xf32> to vector<8x32xf32>
    %368 = arith.mulf %367, %366 : vector<8x32xf32>
    %369 = arith.addf %305, %368 : vector<8x32xf32>
    %370 = vector.extract_strided_slice %337 {offsets = [0, 0], sizes = [8, 96], strides = [1, 1]} : vector<8x288xf32> to vector<8x96xf32>
    %371 = vector.extract_strided_slice %47 {offsets = [40, 0], sizes = [8, 96], strides = [1, 1]} : vector<64x96xf32> to vector<8x96xf32>
    %372 = arith.addf %371, %370 : vector<8x96xf32>
    %373 = vector.extract_strided_slice %372 {offsets = [0, 0], sizes = [8, 64], strides = [1, 1]} : vector<8x96xf32> to vector<8x64xf32>
    %374 = arith.negf %373 : vector<8x64xf32>
    %375 = math.exp %374 : vector<8x64xf32>
    %cst_47 = arith.constant 1.000000e+00 : f32
    %376 = vector.broadcast %cst_47 : f32 to vector<8x64xf32>
    %377 = arith.addf %376, %375 : vector<8x64xf32>
    %378 = arith.divf %376, %377 : vector<8x64xf32>
    %379 = vector.extract_strided_slice %378 {offsets = [0, 0], sizes = [8, 32], strides = [1, 1]} : vector<8x64xf32> to vector<8x32xf32>
    %380 = vector.extract_strided_slice %378 {offsets = [0, 32], sizes = [8, 32], strides = [1, 1]} : vector<8x64xf32> to vector<8x32xf32>
    %381 = vector.extract_strided_slice %371 {offsets = [0, 64], sizes = [8, 32], strides = [1, 1]} : vector<8x96xf32> to vector<8x32xf32>
    %382 = vector.extract_strided_slice %370 {offsets = [0, 64], sizes = [8, 32], strides = [1, 1]} : vector<8x96xf32> to vector<8x32xf32>
    %383 = vector.broadcast %36 : vector<1x32xf32> to vector<8x32xf32>
    %384 = arith.addf %382, %383 : vector<8x32xf32>
    %385 = arith.mulf %379, %384 : vector<8x32xf32>
    %386 = arith.addf %381, %385 : vector<8x32xf32>
    %387 = math.tanh %386 : vector<8x32xf32>
    %cst_48 = arith.constant 1.000000e+00 : f32
    %388 = vector.broadcast %cst_48 : f32 to vector<8x32xf32>
    %389 = arith.subf %388, %380 : vector<8x32xf32>
    %390 = arith.mulf %389, %387 : vector<8x32xf32>
    %391 = arith.mulf %380, %334 : vector<8x32xf32>
    %392 = arith.addf %390, %391 : vector<8x32xf32>
    %393 = vector.broadcast %25 : vector<8x1xf32> to vector<8x32xf32>
    %394 = arith.mulf %393, %392 : vector<8x32xf32>
    %395 = arith.subf %392, %334 : vector<8x32xf32>
    %396 = vector.broadcast %25 : vector<8x1xf32> to vector<8x32xf32>
    %397 = arith.mulf %396, %395 : vector<8x32xf32>
    %398 = arith.addf %334, %397 : vector<8x32xf32>
    %399 = tpu.concatenate %398, %369, %394 in 1 : vector<8x32xf32>, vector<8x32xf32>, vector<8x32xf32> -> vector<8x96xf32>
    %400 = arith.truncf %399 : vector<8x96xf32> to vector<8x96xbf16>
    %cst_49 = arith.constant dense<0.000000e+00> : vector<8x288xf32>
    %401 = tpu.matmul %400, %48, %cst_49 {dimension_numbers = #tpu.dot_dimension_numbers<[1], [0], [0], [1], [0, 0, 1, 1], [], []>} : vector<8x96xbf16>, vector<96x288xbf16>, vector<8x288xf32> -> vector<8x288xf32>
    %402 = vector.extract_strided_slice %401 {offsets = [0, 96], sizes = [8, 96], strides = [1, 1]} : vector<8x288xf32> to vector<8x96xf32>
    %403 = vector.extract_strided_slice %401 {offsets = [0, 192], sizes = [8, 96], strides = [1, 1]} : vector<8x288xf32> to vector<8x96xf32>
    %404 = vector.broadcast %35 : vector<1x96xf32> to vector<8x96xf32>
    %405 = arith.addf %403, %404 : vector<8x96xf32>
    %406 = arith.addf %405, %402 : vector<8x96xf32>
    %407 = vector.extract_strided_slice %406 {offsets = [0, 0], sizes = [8, 64], strides = [1, 1]} : vector<8x96xf32> to vector<8x64xf32>
    %408 = arith.negf %407 : vector<8x64xf32>
    %409 = math.exp %408 : vector<8x64xf32>
    %cst_50 = arith.constant 1.000000e+00 : f32
    %410 = vector.broadcast %cst_50 : f32 to vector<8x64xf32>
    %411 = arith.addf %410, %409 : vector<8x64xf32>
    %412 = arith.divf %410, %411 : vector<8x64xf32>
    %413 = vector.extract_strided_slice %412 {offsets = [0, 0], sizes = [8, 32], strides = [1, 1]} : vector<8x64xf32> to vector<8x32xf32>
    %414 = vector.extract_strided_slice %412 {offsets = [0, 32], sizes = [8, 32], strides = [1, 1]} : vector<8x64xf32> to vector<8x32xf32>
    %415 = vector.extract_strided_slice %405 {offsets = [0, 64], sizes = [8, 32], strides = [1, 1]} : vector<8x96xf32> to vector<8x32xf32>
    %416 = vector.extract_strided_slice %402 {offsets = [0, 64], sizes = [8, 32], strides = [1, 1]} : vector<8x96xf32> to vector<8x32xf32>
    %417 = vector.broadcast %37 : vector<1x32xf32> to vector<8x32xf32>
    %418 = arith.addf %416, %417 : vector<8x32xf32>
    %419 = arith.mulf %413, %418 : vector<8x32xf32>
    %420 = arith.addf %415, %419 : vector<8x32xf32>
    %421 = math.tanh %420 : vector<8x32xf32>
    %cst_51 = arith.constant 1.000000e+00 : f32
    %422 = vector.broadcast %cst_51 : f32 to vector<8x32xf32>
    %423 = arith.subf %422, %414 : vector<8x32xf32>
    %424 = arith.mulf %423, %421 : vector<8x32xf32>
    %425 = arith.mulf %414, %369 : vector<8x32xf32>
    %426 = arith.addf %424, %425 : vector<8x32xf32>
    %427 = vector.broadcast %25 : vector<8x1xf32> to vector<8x32xf32>
    %428 = arith.mulf %427, %426 : vector<8x32xf32>
    %c0_52 = arith.constant 0 : index
    %c160 = arith.constant 160 : index
    %429 = vector.load %arg5[%c0_52, %c160] : memref<8x320xf32, #tpu.memory_space<vmem>>, vector<8x32xf32>
    tpu.vector_store %arg5[%c0_52, %c160], %428 {strides = array<i32>} : memref<8x320xf32, #tpu.memory_space<vmem>>, vector<8x32xf32>,
    %430 = arith.subf %426, %369 : vector<8x32xf32>
    %431 = vector.broadcast %25 : vector<8x1xf32> to vector<8x32xf32>
    %432 = arith.mulf %431, %430 : vector<8x32xf32>
    %433 = arith.addf %369, %432 : vector<8x32xf32>
    %434 = vector.extract_strided_slice %401 {offsets = [0, 0], sizes = [8, 96], strides = [1, 1]} : vector<8x288xf32> to vector<8x96xf32>
    %435 = vector.extract_strided_slice %47 {offsets = [48, 0], sizes = [8, 96], strides = [1, 1]} : vector<64x96xf32> to vector<8x96xf32>
    %436 = arith.addf %435, %434 : vector<8x96xf32>
    %437 = vector.extract_strided_slice %436 {offsets = [0, 0], sizes = [8, 64], strides = [1, 1]} : vector<8x96xf32> to vector<8x64xf32>
    %438 = arith.negf %437 : vector<8x64xf32>
    %439 = math.exp %438 : vector<8x64xf32>
    %cst_53 = arith.constant 1.000000e+00 : f32
    %440 = vector.broadcast %cst_53 : f32 to vector<8x64xf32>
    %441 = arith.addf %440, %439 : vector<8x64xf32>
    %442 = arith.divf %440, %441 : vector<8x64xf32>
    %443 = vector.extract_strided_slice %442 {offsets = [0, 0], sizes = [8, 32], strides = [1, 1]} : vector<8x64xf32> to vector<8x32xf32>
    %444 = vector.extract_strided_slice %442 {offsets = [0, 32], sizes = [8, 32], strides = [1, 1]} : vector<8x64xf32> to vector<8x32xf32>
    %445 = vector.extract_strided_slice %435 {offsets = [0, 64], sizes = [8, 32], strides = [1, 1]} : vector<8x96xf32> to vector<8x32xf32>
    %446 = vector.extract_strided_slice %434 {offsets = [0, 64], sizes = [8, 32], strides = [1, 1]} : vector<8x96xf32> to vector<8x32xf32>
    %447 = vector.broadcast %36 : vector<1x32xf32> to vector<8x32xf32>
    %448 = arith.addf %446, %447 : vector<8x32xf32>
    %449 = arith.mulf %443, %448 : vector<8x32xf32>
    %450 = arith.addf %445, %449 : vector<8x32xf32>
    %451 = math.tanh %450 : vector<8x32xf32>
    %cst_54 = arith.constant 1.000000e+00 : f32
    %452 = vector.broadcast %cst_54 : f32 to vector<8x32xf32>
    %453 = arith.subf %452, %444 : vector<8x32xf32>
    %454 = arith.mulf %453, %451 : vector<8x32xf32>
    %455 = arith.mulf %444, %398 : vector<8x32xf32>
    %456 = arith.addf %454, %455 : vector<8x32xf32>
    %457 = vector.broadcast %29 : vector<8x1xf32> to vector<8x32xf32>
    %458 = arith.mulf %457, %456 : vector<8x32xf32>
    %459 = arith.subf %456, %398 : vector<8x32xf32>
    %460 = vector.broadcast %29 : vector<8x1xf32> to vector<8x32xf32>
    %461 = arith.mulf %460, %459 : vector<8x32xf32>
    %462 = arith.addf %398, %461 : vector<8x32xf32>
    %463 = tpu.concatenate %462, %433, %458 in 1 : vector<8x32xf32>, vector<8x32xf32>, vector<8x32xf32> -> vector<8x96xf32>
    %464 = arith.truncf %463 : vector<8x96xf32> to vector<8x96xbf16>
    %cst_55 = arith.constant dense<0.000000e+00> : vector<8x288xf32>
    %465 = tpu.matmul %464, %48, %cst_55 {dimension_numbers = #tpu.dot_dimension_numbers<[1], [0], [0], [1], [0, 0, 1, 1], [], []>} : vector<8x96xbf16>, vector<96x288xbf16>, vector<8x288xf32> -> vector<8x288xf32>
    %466 = vector.extract_strided_slice %465 {offsets = [0, 96], sizes = [8, 96], strides = [1, 1]} : vector<8x288xf32> to vector<8x96xf32>
    %467 = vector.extract_strided_slice %465 {offsets = [0, 192], sizes = [8, 96], strides = [1, 1]} : vector<8x288xf32> to vector<8x96xf32>
    %468 = vector.broadcast %35 : vector<1x96xf32> to vector<8x96xf32>
    %469 = arith.addf %467, %468 : vector<8x96xf32>
    %470 = arith.addf %469, %466 : vector<8x96xf32>
    %471 = vector.extract_strided_slice %470 {offsets = [0, 0], sizes = [8, 64], strides = [1, 1]} : vector<8x96xf32> to vector<8x64xf32>
    %472 = arith.negf %471 : vector<8x64xf32>
    %473 = math.exp %472 : vector<8x64xf32>
    %cst_56 = arith.constant 1.000000e+00 : f32
    %474 = vector.broadcast %cst_56 : f32 to vector<8x64xf32>
    %475 = arith.addf %474, %473 : vector<8x64xf32>
    %476 = arith.divf %474, %475 : vector<8x64xf32>
    %477 = vector.extract_strided_slice %476 {offsets = [0, 0], sizes = [8, 32], strides = [1, 1]} : vector<8x64xf32> to vector<8x32xf32>
    %478 = vector.extract_strided_slice %476 {offsets = [0, 32], sizes = [8, 32], strides = [1, 1]} : vector<8x64xf32> to vector<8x32xf32>
    %479 = vector.extract_strided_slice %469 {offsets = [0, 64], sizes = [8, 32], strides = [1, 1]} : vector<8x96xf32> to vector<8x32xf32>
    %480 = vector.extract_strided_slice %466 {offsets = [0, 64], sizes = [8, 32], strides = [1, 1]} : vector<8x96xf32> to vector<8x32xf32>
    %481 = vector.broadcast %37 : vector<1x32xf32> to vector<8x32xf32>
    %482 = arith.addf %480, %481 : vector<8x32xf32>
    %483 = arith.mulf %477, %482 : vector<8x32xf32>
    %484 = arith.addf %479, %483 : vector<8x32xf32>
    %485 = math.tanh %484 : vector<8x32xf32>
    %cst_57 = arith.constant 1.000000e+00 : f32
    %486 = vector.broadcast %cst_57 : f32 to vector<8x32xf32>
    %487 = arith.subf %486, %478 : vector<8x32xf32>
    %488 = arith.mulf %487, %485 : vector<8x32xf32>
    %489 = arith.mulf %478, %433 : vector<8x32xf32>
    %490 = arith.addf %488, %489 : vector<8x32xf32>
    %491 = vector.broadcast %29 : vector<8x1xf32> to vector<8x32xf32>
    %492 = arith.mulf %491, %490 : vector<8x32xf32>
    %c0_58 = arith.constant 0 : index
    %c192 = arith.constant 192 : index
    %493 = vector.load %arg5[%c0_58, %c192] : memref<8x320xf32, #tpu.memory_space<vmem>>, vector<8x32xf32>
    tpu.vector_store %arg5[%c0_58, %c192], %492 {strides = array<i32>} : memref<8x320xf32, #tpu.memory_space<vmem>>, vector<8x32xf32>,
    %494 = arith.subf %490, %433 : vector<8x32xf32>
    %495 = vector.broadcast %29 : vector<8x1xf32> to vector<8x32xf32>
    %496 = arith.mulf %495, %494 : vector<8x32xf32>
    %497 = arith.addf %433, %496 : vector<8x32xf32>
    %498 = vector.extract_strided_slice %465 {offsets = [0, 0], sizes = [8, 96], strides = [1, 1]} : vector<8x288xf32> to vector<8x96xf32>
    %499 = vector.extract_strided_slice %47 {offsets = [56, 0], sizes = [8, 96], strides = [1, 1]} : vector<64x96xf32> to vector<8x96xf32>
    %500 = arith.addf %499, %498 : vector<8x96xf32>
    %501 = vector.extract_strided_slice %500 {offsets = [0, 0], sizes = [8, 64], strides = [1, 1]} : vector<8x96xf32> to vector<8x64xf32>
    %502 = arith.negf %501 : vector<8x64xf32>
    %503 = math.exp %502 : vector<8x64xf32>
    %cst_59 = arith.constant 1.000000e+00 : f32
    %504 = vector.broadcast %cst_59 : f32 to vector<8x64xf32>
    %505 = arith.addf %504, %503 : vector<8x64xf32>
    %506 = arith.divf %504, %505 : vector<8x64xf32>
    %507 = vector.extract_strided_slice %506 {offsets = [0, 0], sizes = [8, 32], strides = [1, 1]} : vector<8x64xf32> to vector<8x32xf32>
    %508 = vector.extract_strided_slice %506 {offsets = [0, 32], sizes = [8, 32], strides = [1, 1]} : vector<8x64xf32> to vector<8x32xf32>
    %509 = vector.extract_strided_slice %499 {offsets = [0, 64], sizes = [8, 32], strides = [1, 1]} : vector<8x96xf32> to vector<8x32xf32>
    %510 = vector.extract_strided_slice %498 {offsets = [0, 64], sizes = [8, 32], strides = [1, 1]} : vector<8x96xf32> to vector<8x32xf32>
    %511 = vector.broadcast %36 : vector<1x32xf32> to vector<8x32xf32>
    %512 = arith.addf %510, %511 : vector<8x32xf32>
    %513 = arith.mulf %507, %512 : vector<8x32xf32>
    %514 = arith.addf %509, %513 : vector<8x32xf32>
    %515 = math.tanh %514 : vector<8x32xf32>
    %cst_60 = arith.constant 1.000000e+00 : f32
    %516 = vector.broadcast %cst_60 : f32 to vector<8x32xf32>
    %517 = arith.subf %516, %508 : vector<8x32xf32>
    %518 = arith.mulf %517, %515 : vector<8x32xf32>
    %519 = arith.mulf %508, %462 : vector<8x32xf32>
    %520 = arith.addf %518, %519 : vector<8x32xf32>
    %521 = vector.broadcast %33 : vector<8x1xf32> to vector<8x32xf32>
    %522 = arith.mulf %521, %520 : vector<8x32xf32>
    %523 = arith.subf %520, %462 : vector<8x32xf32>
    %524 = vector.broadcast %33 : vector<8x1xf32> to vector<8x32xf32>
    %525 = arith.mulf %524, %523 : vector<8x32xf32>
    %526 = arith.addf %462, %525 : vector<8x32xf32>
    %527 = tpu.concatenate %526, %497, %522 in 1 : vector<8x32xf32>, vector<8x32xf32>, vector<8x32xf32> -> vector<8x96xf32>
    %528 = arith.truncf %527 : vector<8x96xf32> to vector<8x96xbf16>
    %cst_61 = arith.constant dense<0.000000e+00> : vector<8x288xf32>
    %529 = tpu.matmul %528, %48, %cst_61 {dimension_numbers = #tpu.dot_dimension_numbers<[1], [0], [0], [1], [0, 0, 1, 1], [], []>} : vector<8x96xbf16>, vector<96x288xbf16>, vector<8x288xf32> -> vector<8x288xf32>
    %530 = vector.extract_strided_slice %529 {offsets = [0, 96], sizes = [8, 96], strides = [1, 1]} : vector<8x288xf32> to vector<8x96xf32>
    %531 = vector.extract_strided_slice %529 {offsets = [0, 192], sizes = [8, 96], strides = [1, 1]} : vector<8x288xf32> to vector<8x96xf32>
    %532 = vector.broadcast %35 : vector<1x96xf32> to vector<8x96xf32>
    %533 = arith.addf %531, %532 : vector<8x96xf32>
    %534 = arith.addf %533, %530 : vector<8x96xf32>
    %535 = vector.extract_strided_slice %534 {offsets = [0, 0], sizes = [8, 64], strides = [1, 1]} : vector<8x96xf32> to vector<8x64xf32>
    %536 = arith.negf %535 : vector<8x64xf32>
    %537 = math.exp %536 : vector<8x64xf32>
    %cst_62 = arith.constant 1.000000e+00 : f32
    %538 = vector.broadcast %cst_62 : f32 to vector<8x64xf32>
    %539 = arith.addf %538, %537 : vector<8x64xf32>
    %540 = arith.divf %538, %539 : vector<8x64xf32>
    %541 = vector.extract_strided_slice %540 {offsets = [0, 0], sizes = [8, 32], strides = [1, 1]} : vector<8x64xf32> to vector<8x32xf32>
    %542 = vector.extract_strided_slice %540 {offsets = [0, 32], sizes = [8, 32], strides = [1, 1]} : vector<8x64xf32> to vector<8x32xf32>
    %543 = vector.extract_strided_slice %533 {offsets = [0, 64], sizes = [8, 32], strides = [1, 1]} : vector<8x96xf32> to vector<8x32xf32>
    %544 = vector.extract_strided_slice %530 {offsets = [0, 64], sizes = [8, 32], strides = [1, 1]} : vector<8x96xf32> to vector<8x32xf32>
    %545 = vector.broadcast %37 : vector<1x32xf32> to vector<8x32xf32>
    %546 = arith.addf %544, %545 : vector<8x32xf32>
    %547 = arith.mulf %541, %546 : vector<8x32xf32>
    %548 = arith.addf %543, %547 : vector<8x32xf32>
    %549 = math.tanh %548 : vector<8x32xf32>
    %cst_63 = arith.constant 1.000000e+00 : f32
    %550 = vector.broadcast %cst_63 : f32 to vector<8x32xf32>
    %551 = arith.subf %550, %542 : vector<8x32xf32>
    %552 = arith.mulf %551, %549 : vector<8x32xf32>
    %553 = arith.mulf %542, %497 : vector<8x32xf32>
    %554 = arith.addf %552, %553 : vector<8x32xf32>
    %555 = vector.broadcast %33 : vector<8x1xf32> to vector<8x32xf32>
    %556 = arith.mulf %555, %554 : vector<8x32xf32>
    %c0_64 = arith.constant 0 : index
    %c224 = arith.constant 224 : index
    %557 = vector.load %arg5[%c0_64, %c224] : memref<8x320xf32, #tpu.memory_space<vmem>>, vector<8x32xf32>
    tpu.vector_store %arg5[%c0_64, %c224], %556 {strides = array<i32>} : memref<8x320xf32, #tpu.memory_space<vmem>>, vector<8x32xf32>,
    %558 = arith.subf %554, %497 : vector<8x32xf32>
    %559 = vector.broadcast %33 : vector<8x1xf32> to vector<8x32xf32>
    %560 = arith.mulf %559, %558 : vector<8x32xf32>
    %561 = arith.addf %497, %560 : vector<8x32xf32>
    %c0_65 = arith.constant 0 : index
    %c256 = arith.constant 256 : index
    %562 = vector.load %arg5[%c0_65, %c256] : memref<8x320xf32, #tpu.memory_space<vmem>>, vector<8x32xf32>
    tpu.vector_store %arg5[%c0_65, %c256], %526 {strides = array<i32>} : memref<8x320xf32, #tpu.memory_space<vmem>>, vector<8x32xf32>,
    %c0_66 = arith.constant 0 : index
    %c288 = arith.constant 288 : index
    %563 = vector.load %arg5[%c0_66, %c288] : memref<8x320xf32, #tpu.memory_space<vmem>>, vector<8x32xf32>
    tpu.vector_store %arg5[%c0_66, %c288], %561 {strides = array<i32>} : memref<8x320xf32, #tpu.memory_space<vmem>>, vector<8x32xf32>,
    return
  }
  func.func @transform_0(%arg0: i32) -> (i32, i32) {
    %c0_i32 = arith.constant 0 : i32
    %c0_i32_0 = arith.constant 0 : i32
    %c0_i32_1 = arith.constant 0 : i32
    return %c0_i32, %c0_i32_0 : i32, i32
  }
  func.func @transform_1(%arg0: i32) -> (i32, i32) {
    %c0_i32 = arith.constant 0 : i32
    %c0_i32_0 = arith.constant 0 : i32
    %c0_i32_1 = arith.constant 0 : i32
    return %c0_i32, %c0_i32_0 : i32, i32
  }
  func.func @transform_2(%arg0: i32) -> (i32, i32) {
    %c0_i32 = arith.constant 0 : i32
    %c0_i32_0 = arith.constant 0 : i32
    %c0_i32_1 = arith.constant 0 : i32
    return %c0_i32, %c0_i32_0 : i32, i32
  }
  func.func @transform_3(%arg0: i32) -> (i32, i32) {
    %c0_i32 = arith.constant 0 : i32
    %c0_i32_0 = arith.constant 0 : i32
    %c0_i32_1 = arith.constant 0 : i32
    return %c0_i32, %c0_i32_0 : i32, i32
  }
  func.func @transform_4(%arg0: i32) -> (i32, i32) {
    %c0_i32 = arith.constant 0 : i32
    %c0_i32_0 = arith.constant 0 : i32
    %c0_i32_1 = arith.constant 0 : i32
    return %c0_i32, %c0_i32_0 : i32, i32
  }
}

</mosaic_0001>

<bundles_post_ra>
// kernel: tpu_custom_call.1
= control target key start
LH: loop header
LB: loop body
LE: loop exit
PB: predicated region body
PF: predicated region fallthrough
CT: control target
= control target key end

     0   :  { %9 = vsyncpa [#allocation3], 0  ;;  %s3112_s0 = inlined_call_operand.vmem [shape: s32[72,1], index: 0, kind: input, shape index: {}]   ;;  %s3113_s1 = inlined_call_operand.vmem [shape: bf16[64,96], index: 1, kind: input, shape index: {}]   ;;  %s3114_s2 = inlined_call_operand.hbm [shape: bf16[96,288], index: 2, kind: input, shape index: {}]   ;;  %s3115_s3 = inlined_call_operand.vmem [shape: f32[2,128], index: 3, kind: input, shape index: {}]   ;;  %s3116_s4 = inlined_call_operand.hbm [shape: f32[8,320], index: 4, kind: output, shape index: {}]  }
   0x1   :  { %10 = vsyncpa [#allocation4], 0  ;;  %s2306_s15 = smov [#allocation2]   ;;  %s2258_s19 = scalar_lea.hbm %s3114_s2, 2304 }
   0x2   :  { %s20_s16 = sshll.u32 %s2306_s15, 4  ;;  %p2259_p0 = scmp.ne.s32.totalorder %s3114_s2, %s2258_s19  ;;  %s21_s16 = int_to_ptr.vmem [resolvable:$true] %s20_s16 }
   0x3   :  { %p2262_p1 = scmp.lt.u32.totalorder %s2258_s19, %s3114_s2 }
   0x5   :  { %p2264_p2 = pnand %p2262_p1, %p2259_p0 }
   0x7   :  { %2267 = shalt.err (!%p2264_p2)
}
   0x8   :  { %s2268_s24 = scalar_lea.vmem %s21_s16, 2304  ;;  %p2273_p4 = scmp.lt.s32.totalorder %s21_s16, %s21_s16 }
   0x9   :  { %p2269_p3 = scmp.ne.s32.totalorder %s21_s16, %s2268_s24  ;;  %p2274_p5 = scmp.lt.s32.totalorder %s2268_s24, %s2268_s24 }
   0xb   :  { %p2275_p6 = por %p2274_p5, %p2273_p4 }
   0xd   :  { %p2276_p7 = pnand %p2275_p6, %p2269_p3 }
   0xf   :  { %2279 = shalt.err (!%p2276_p7)
}
  0x10   :  { %s2307_s25 = smov 192   ;;  %s2308_s26 = smov 12  }
  0x11   :  { %26 = dma.hbm_to_vmem [thread:$0]  %s3114_s2, 2304, %s21_s16, [#allocation3], %s2307_s25, %s2307_s25, %s2308_s26  }
  0x12   :  { %2302 = dma.done.wait [#allocation3], 2304  }
  0x13   :  { %2303 = vsyncadd [#allocation3], 4294964992  ;;  %v2309_v0 = vmov 0   ;;  %v35_v1 = vld [vmem:[%s3112_s0 + $0x10] sm:$0xff]  ;;  %v33_v2 = vld [vmem:[%s3112_s0] sm:$0xff]  ;;  %s2310_s20 = smov 32   ;;  %v68_v13 = vlaneseq }
  0x14   :  { %2113 = vset.pattern.permute.xlu1 %v2309_v0  ;;  %2112 = vset.pattern.permute.xlu0 %v2309_v0  ;;  %v36_v3 = vld [vmem:[%s3112_s0 + $0x18] sm:$0xff]  ;;  %v34_v4 = vld [vmem:[%s3112_s0 + $0x8] sm:$0xff]  ;;  %v2371_v5 = vld [vmem:[%s3112_s0 + $0x40] sm:$0xff]  ;;  %v2311_v10 = vmov 0.0   ;;  %vm158_vm5 = vcmask 523264   ;;  %s2313_s23 = smov 96  }
  0x15   :  { %438 = vmatprep.mubr.bf16.mxu1 %v2309_v0  ;;  %77 = vperm.xlu1 %2113, %v35_v1   ;;  %v2114_v6 = vld [vmem:[%s3113_s1] sm:$0xff]   ;;  %v2115_v7 = vld [vmem:[%s3113_s1 + $0x8] sm:$0xff]   ;;  %v2116_v9 = vld [vmem:[%s3113_s1 + $0x10] sm:$0xff]   ;;  %vm42_vm0 = vcmp.gt.s32.totalorder %v2371_v5, 0  ;;  %v2395_v14 = vand.u32 127, %v68_v13  ;;  %vm302_vm6 = vcmask 261120  }
  0x16   :  { %71 = vperm.xlu0 %2112, %v33_v2   ;;  %v2382_v8 = vld [vmem:[%s3115_s3] ss:$0 sm:$0xff]  ;;  %1958 = vmatprep.subr.bf16.mxu0 %v2114_v6  ;;  %v1818_v11 = vsel %vm42_vm0, 1.0, %v2311_v10  ;;  %v2117_v12 = vld [vmem:[%s3113_s1 + $0x18] sm:$0xff]   ;;  %s2312_s1 = smov 64   ;;  %v38_v60 = vld [vmem:[%s3112_s0 + $0x28] sm:$0xff] }
  0x17   :  { %1959 = vmatpush3.bf16.msra.mxu0 %v2114_v6  ;;  %v2416_v39 = vld [vmem:[#allocation2 + $0x4] ss:$12 sps:$4 sm:$0xff]   ;;  %v2418_v40 = vld [vmem:[#allocation2] ss:$12 sps:$4 sm:$0xff]   ;;  %v2420_v41 = vld [vmem:[#allocation2 + $0x1c] ss:$12 sps:$4 sm:$0xff]  }
  0x18   :  { %1960 = vmatprep.subr.bf16.mxu0 %v2115_v7  ;;  %406 = vmatprep.subr.bf16.mxu1 %v2416_v39  ;;  %v2424_v42 = vld [vmem:[#allocation2 + $0x18] ss:$12 sps:$4 sm:$0xff]   ;;  %v2427_v43 = vld [vmem:[#allocation2 + $0x34] ss:$12 sps:$4 sm:$0xff]   ;;  %v2430_v44 = vld [vmem:[#allocation2 + $0x30] ss:$12 sps:$4 sm:$0xff]  }
  0x19   :  { %80 = vperm.xlu1 %2113, %v36_v3   ;;  %407 = vmatpush1.bf16.msra.mxu1 %v2418_v40  ;;  %v2433_v45 = vld [vmem:[#allocation2 + $0x4c] ss:$12 sps:$4 sm:$0xff]   ;;  %v2436_v46 = vld [vmem:[#allocation2 + $0x48] ss:$12 sps:$4 sm:$0xff]   ;;  %v2439_v47 = vld [vmem:[#allocation2 + $0x64] ss:$12 sps:$4 sm:$0xff]  }
  0x1a   :  { %74 = vperm.xlu0 %2112, %v34_v4   ;;  %408 = vmatprep.subr.bf16.mxu1 %v2420_v41  ;;  %v2442_v48 = vld [vmem:[#allocation2 + $0x60] ss:$12 sps:$4 sm:$0xff]   ;;  %v2446_v49 = vld [vmem:[#allocation2 + $0x7c] ss:$12 sps:$4 sm:$0xff]   ;;  %v2448_v50 = vld [vmem:[#allocation2 + $0x78] ss:$12 sps:$4 sm:$0xff]  }
  0x1b   :  { %1961 = vmatpush3.bf16.msra.mxu0 %v2115_v7  ;;  %v2453_v51 = vld [vmem:[#allocation2 + $0x8] ss:$12 sps:$4 sm:$0xff]   ;;  %v2456_v54 = vld [vmem:[#allocation2 + $0x20] ss:$12 sps:$4 sm:$0xff]   ;;  %v2476_v62 = vld [vmem:[#allocation2 + $0x38] ss:$12 sps:$4 sm:$0xff]  }
  0x1c   :  { %1962 = vmatprep.subr.bf16.mxu0 %v2116_v9  ;;  %v37_v61 = vld [vmem:[%s3112_s0 + $0x20] sm:$0xff]  ;;  %v40_v63 = vld [vmem:[%s3112_s0 + $0x38] sm:$0xff]  ;;  %v39_v1 = vld [vmem:[%s3112_s0 + $0x30] sm:$0xff]  ;;  %vm402_vm7 = vcmask 785408   ;;  %vm2314_vm12 = vmmov 0   ;;  %vm45_vm13 = vcmp.gt.s32.totalorder %v2371_v5, 1 }
  0x1d   :  { %409 = vmatpush1.bf16.msra.mxu1 %v2424_v42  ;;  %v2486_v2 = vld [vmem:[#allocation2 + $0x50] ss:$12 sps:$4 sm:$0xff]   ;;  %v2490_v3 = vld [vmem:[#allocation2 + $0x68] ss:$12 sps:$4 sm:$0xff]   ;;  %v2495_v4 = vld [vmem:[#allocation2 + $0x80] ss:$12 sps:$4 sm:$0xff]  }
  0x1e   :  { %269 = vrot.lane.b32.xlu0 %v2382_v8, %s2310_s20  ;;  %410 = vmatprep.subr.bf16.mxu1 %v2427_v43  ;;  %v1864_v6 = vld [vmem:[%s3115_s3 + $0x1] ss:$0 sm:$0xff]  ;;  %vm48_vm14 = vcmp.gt.s32.totalorder %v2371_v5, 2  ;;  %vm51_vm15 = vcmp.gt.s32.totalorder %v2371_v5, 3 }
  0x1f   :  { %1963 = vmatpush3.bf16.msra.mxu0 %v2116_v9 }
  0x20   :  { %1964 = vmatprep.subr.bf16.mxu0 %v2117_v12 }
  0x21   :  { %411 = vmatpush1.bf16.msra.mxu1 %v2430_v44 }
  0x22   :  { %289 = vperm.xlu0 %2112, %v1818_v11   ;;  %412 = vmatprep.subr.bf16.mxu1 %v2433_v45 }
  0x23   :  { %1965 = vmatpush3.bf16.msra.mxu0 %v2117_v12 }
  0x24   :  { %1974 = vmatprep.subr.bf16.mxu0 %v2311_v10 }
  0x25   :  { %413 = vmatpush1.bf16.msra.mxu1 %v2436_v46 }
  0x26   :  { %414 = vmatprep.subr.bf16.mxu1 %v2439_v47 }
  0x29   :  { %415 = vmatpush1.bf16.msra.mxu1 %v2442_v48 }
  0x2a   :  { %416 = vmatprep.subr.bf16.mxu1 %v2446_v49 }
  0x2d   :  { %417 = vmatpush1.bf16.msra.mxu1 %v2448_v50 }
  0x2e   :  { %596 = vmatprep.subr.bf16.mxu1 %v2416_v39 }
  0x94   :  { %v78_v15 = vpop.permute.xlu1 %77 }
  0x95   :  { %v72_v16 = vpop.permute.xlu0 %71  ;;  %vm96_vm1 = vcmp.eq.s32.totalorder %v78_v15, %v2395_v14 }
  0x96   :  { %vm94_vm2 = vcmp.eq.s32.totalorder %v72_v16, %v2395_v14  ;;  %v1828_v19 = vsel %vm96_vm1, 1.0, %v2311_v10 }
  0x97   :  { %v1826_v21 = vsel %vm94_vm2, 1.0, %v2311_v10 }
  0x98   :  { %v81_v17 = vpop.permute.xlu1 %80 }
  0x99   :  { %v75_v18 = vpop.permute.xlu0 %74  ;;  %vm97_vm3 = vcmp.eq.s32.totalorder %v81_v17, %v2395_v14 }
  0x9a   :  { %vm95_vm4 = vcmp.eq.s32.totalorder %v75_v18, %v2395_v14  ;;  %v1829_v20 = vsel %vm97_vm3, 1.0, %v2311_v10 }
  0x9b   :  { %v1827_v22 = vsel %vm95_vm4, 1.0, %v2311_v10  ;;  %v119_v23 = vpack.c.bf16 %v1829_v20, %v1828_v19  ;;  %vm718_vm4 = vcmask 523520  }
  0x9c   :  { %v118_v24 = vpack.c.bf16 %v1827_v22, %v1826_v21 }
  0x9d   :  { %v270_v34 = vpop.permute.xlu0 %269 }
  0x9e   :  { %1966 = vmatprep.mubr.msk.bf16.mxu0 %vm158_vm5, %v118_v24 }
  0x9f   :  { %1967 = vmatmul.mubr.msk.bf16.vlgmr.msra.gmra.mrb[0].mxu0 %vm158_vm5, %v119_v23 }
  0xa0   :  { %1975 = vmatpush3.bf16.msra.mxu0 %v2453_v51 }
  0xa1   :  { %1976 = vmatprep.subr.bf16.mxu0 %v2311_v10  ;;  %v2459_v58 = vpop.permute.xlu0 %289 }
  0xa4   :  { %1977 = vmatpush3.bf16.msra.mxu0 %v2456_v54 }
  0xa5   :  { %1978 = vmatprep.subr.bf16.mxu0 %v2311_v10 }
  0xa8   :  { %1979 = vmatpush3.bf16.msra.mxu0 %v2476_v62 }
  0xa9   :  { %1980 = vmatprep.subr.bf16.mxu0 %v2311_v10 }
  0xac   :  { %1981 = vmatpush3.bf16.msra.mxu0 %v2486_v2 }
  0xad   :  { %1982 = vmatprep.subr.bf16.mxu0 %v2311_v10 }
  0xb0   :  { %1983 = vmatpush3.bf16.msra.mxu0 %v2490_v3 }
  0xb1   :  { %1984 = vmatprep.subr.bf16.mxu0 %v2311_v10 }
  0xb4   :  { %1985 = vmatpush3.bf16.msra.mxu0 %v2495_v4 }
  0xb5   :  { %1990 = vmatprep.subr.bf16.mxu0 %v2311_v10 }
 0x172   :  { %v2407_v25 = vpop.f32.mrb[0].mxu0 }
 0x173   :  { %v205_v26 = vpop.f32.mrb[1].mxu0 }
 0x174   :  { %v206_v27 = vadd.f32 %v2382_v8, %v205_v26  ;;  %v2410_v28 = vpop.f32.mrb[2].mxu0 }
 0x175   :  { %v2412_v29 = vpop.f32.mrb[3].mxu0 }
 0x176   :  { %v1843_v30 = vmul.f32 -1.442695, %v206_v27 }
 0x178   :  { %2142 = vpow2.f32 %v1843_v30 }
 0x182   :  { %v2143_v31 = vpop.eup %2142 }
 0x183   :  { %v264_v32 = vadd.f32 1.0, %v2143_v31 }
 0x185   :  { %2144 = vrcp.f32 %v264_v32 }
 0x18f   :  { %v2145_v33 = vpop.eup %2144 }
 0x190   :  { %v272_v35 = vmul.f32 %v2145_v33, %v270_v34  ;;  %v279_v52 = vsub.f32 1.0, %v2145_v33  ;;  %v285_v55 = vmul.f32 0.0, %v2145_v33 }
 0x192   :  { %274 = vrot.lane.b32.xlu1 %v272_v35, %s2312_s1 }
 0x204   :  { %v275_v36 = vpop.permute.xlu1 %274 }
 0x205   :  { %v277_v37 = vadd.f32 %v275_v36, %v206_v27 }
 0x207   :  { %2146 = vtanh.f32 %v277_v37 }
 0x211   :  { %v2147_v38 = vpop.eup %2146 }
 0x212   :  { %281 = vrot.lane.b32.xlu1 %v2147_v38, %s2313_s23 }
 0x284   :  { %v282_v53 = vpop.permute.xlu1 %281 }
 0x285   :  { %v284_v56 = vmul.f32 %v282_v53, %v279_v52 }
 0x287   :  { %v286_v57 = vadd.f32 %v285_v55, %v284_v56 }
 0x289   :  { %v2463_v59 = vmul.f32 %v2459_v58, %v286_v57  ;;  %v209_v57 = vadd.f32 %v2382_v8, %v2412_v29  ;;  %v1819_v29 = vsel %vm45_vm13, 1.0, %v2311_v10 }
 0x28b   :  { %299 = vrot.lane.b32.xlu1 %v2463_v59, %s2310_s20  ;;  %295 = vrot.lane.b32.xlu0 %v2463_v59, %s2313_s23 }
 0x28f   :  { %86 = vperm.xlu1 %2113, %v38_v60   ;;  %83 = vperm.xlu0 %2112, %v37_v61  }
 0x293   :  { %92 = vperm.xlu1 %2113, %v40_v63   ;;  %89 = vperm.xlu0 %2112, %v39_v1  }
 0x297   :  { %546 = vrot.lane.b32.xlu0 %v2382_v8, %s2313_s23  ;;  %492 = vrot.lane.b32.xlu1 %v1864_v6, %s2312_s1 }
 0x2fd   :  { %v300_v7 = vpop.permute.xlu1 %299  ;;  %v296_v9 = vpop.permute.xlu0 %295 }
 0x2fe   :  { %v303_v11 = vsel %vm302_vm6, %v296_v9, 0.0 }
 0x2ff   :  { %v304_v12 = vsel %vm158_vm5, %v303_v11, %v300_v7 }
 0x300   :  { %v305_v13 = vpack.c.bf16 %v304_v12, %v304_v12 }
 0x302   :  { %1862 = vmatmul.mubr.msk.bf16.vlgmr.msra.gmra.mrb[0].mxu1 %vm402_vm7, %v305_v13 }
 0x303   :  { %597 = vmatpush1.bf16.msra.mxu1 %v2418_v40  ;;  %628 = vmatprep.mubr.bf16.mxu1 %v2309_v0 }
 0x304   :  { %598 = vmatprep.subr.bf16.mxu1 %v2420_v41 }
 0x307   :  { %599 = vmatpush1.bf16.msra.mxu1 %v2424_v42 }
 0x308   :  { %600 = vmatprep.subr.bf16.mxu1 %v2427_v43 }
 0x30b   :  { %601 = vmatpush1.bf16.msra.mxu1 %v2430_v44 }
 0x30c   :  { %602 = vmatprep.subr.bf16.mxu1 %v2433_v45 }
 0x30e   :  { %v87_v15 = vpop.permute.xlu1 %86  ;;  %v84_v16 = vpop.permute.xlu0 %83 }
 0x30f   :  { %vm99_vm8 = vcmp.eq.s32.totalorder %v87_v15, %v2395_v14  ;;  %vm98_vm9 = vcmp.eq.s32.totalorder %v84_v16, %v2395_v14  ;;  %603 = vmatpush1.bf16.msra.mxu1 %v2436_v46 }
 0x310   :  { %v1831_v17 = vsel %vm99_vm8, 1.0, %v2311_v10  ;;  %v1830_v18 = vsel %vm98_vm9, 1.0, %v2311_v10  ;;  %604 = vmatprep.subr.bf16.mxu1 %v2439_v47 }
 0x311   :  { %v120_v19 = vpack.c.bf16 %v1831_v17, %v1830_v18 }
 0x312   :  { %v93_v20 = vpop.permute.xlu1 %92  ;;  %v90_v21 = vpop.permute.xlu0 %89 }
 0x313   :  { %vm101_vm10 = vcmp.eq.s32.totalorder %v93_v20, %v2395_v14  ;;  %vm100_vm11 = vcmp.eq.s32.totalorder %v90_v21, %v2395_v14  ;;  %1970 = vmatprep.mubr.msk.bf16.mxu0 %vm158_vm5, %v120_v19  ;;  %605 = vmatpush1.bf16.msra.mxu1 %v2442_v48 }
 0x314   :  { %v1833_v22 = vsel %vm101_vm10, 1.0, %v2311_v10  ;;  %v1832_v23 = vsel %vm100_vm11, 1.0, %v2311_v10  ;;  %606 = vmatprep.subr.bf16.mxu1 %v2446_v49 }
 0x315   :  { %v121_v24 = vpack.c.bf16 %v1833_v22, %v1832_v23 }
 0x316   :  { %v2547_v26 = vpop.permute.xlu0 %546  ;;  %v2549_v27 = vpop.permute.xlu1 %492 }
 0x317   :  { %1971 = vmatmul.mubr.msk.bf16.gmra.mrb[4].mxu0 %vm158_vm5, %v121_v24  ;;  %607 = vmatpush1.bf16.msra.mxu1 %v2448_v50 }
 0x318   :  { %1986 = vmatprep.mubr.msk.bf16.mxu0 %vm2314_vm12, %v2311_v10  ;;  %777 = vmatprep.subr.bf16.mxu1 %v2416_v39 }
 0x31f   :  { %1987 = vmatmul.mubr.msk.bf16.vlgmr.msra.gmra.mrb[8].mxu0 %vm402_vm7, %v305_v13 }
 0x320   :  { %1991 = vmatpush3.bf16.msra.mxu0 %v2453_v51  ;;  %2002 = vmatprep.mubr.msk.bf16.mxu0 %vm2314_vm12, %v2311_v10 }
 0x321   :  { %1992 = vmatprep.subr.bf16.mxu0 %v2311_v10 }
 0x324   :  { %1993 = vmatpush3.bf16.msra.mxu0 %v2456_v54 }
 0x325   :  { %1994 = vmatprep.subr.bf16.mxu0 %v2311_v10 }
 0x328   :  { %1995 = vmatpush3.bf16.msra.mxu0 %v2476_v62 }
 0x329   :  { %1996 = vmatprep.subr.bf16.mxu0 %v2311_v10 }
 0x32c   :  { %1997 = vmatpush3.bf16.msra.mxu0 %v2486_v2 }
 0x32d   :  { %1998 = vmatprep.subr.bf16.mxu0 %v2311_v10 }
 0x330   :  { %1999 = vmatpush3.bf16.msra.mxu0 %v2490_v3 }
 0x331   :  { %2000 = vmatprep.subr.bf16.mxu0 %v2311_v10 }
 0x334   :  { %2001 = vmatpush3.bf16.msra.mxu0 %v2495_v4 }
 0x335   :  { %2006 = vmatprep.subr.bf16.mxu0 %v2311_v10 }
 0x3d5   :  { %v440_v14 = vpop.f32.mrb[0].mxu1 }
 0x3d6   :  { %499 = vrot.lane.b32.xlu0 %v440_v14, %s2313_s23  ;;  %v442_v30 = vpop.f32.mrb[1].mxu1  ;;  %v549_v33 = vadd.f32 %v2547_v26, %v440_v14  ;;  %v538_v60 = vadd.f32 %v440_v14, %v209_v57 }
 0x3d7   :  { %501 = vrot.lane.b32.xlu1 %v442_v30, %s2313_s23  ;;  %v444_v31 = vpop.f32.mrb[2].mxu1  ;;  %v495_v34 = vadd.f32 %v2549_v27, %v442_v30 }
 0x3d8   :  { %v445_v32 = vpop.f32.mrb[3].mxu1  ;;  %v1866_v61 = vmul.f32 -1.442695, %v538_v60 }
 0x3da   :  { %551 = vrot.lane.b32.xlu0 %v549_v33, %s2312_s1  ;;  %2148 = vpow2.f32 %v1866_v61 }
 0x3db   :  { %513 = vrot.lane.b32.xlu1 %v495_v34, %s2310_s20 }
 0x3e4   :  { %v2149_v63 = vpop.eup %2148 }
 0x3e5   :  { %v542_v1 = vadd.f32 1.0, %v2149_v63 }
 0x3e7   :  { %2150 = vrcp.f32 %v542_v1 }
 0x3ea   :  { %v2557_v35 = vpop.f32.mrb[4].mxu0 }
 0x3eb   :  { %v2559_v36 = vpop.f32.mrb[5].mxu0 }
 0x3ec   :  { %v2561_v37 = vpop.f32.mrb[6].mxu0 }
 0x3ed   :  { %v2563_v38 = vpop.f32.mrb[7].mxu0 }
 0x3f1   :  { %v2151_v12 = vpop.eup %2150 }
 0x3f2   :  { %v481_v52 = vpop.f32.mrb[8].mxu0  ;;  %v561_v33 = vsub.f32 1.0, %v2151_v12 }
 0x3f3   :  { %v1988_v53 = vpop.f32.mrb[9].mxu0  ;;  %v496_v14 = vadd.f32 %v2549_v27, %v481_v52 }
 0x3f4   :  { %v484_v55 = vpop.f32.mrb[10].mxu0  ;;  %v567_v53 = vmul.f32 %v2151_v12, %v2463_v59 }
 0x3f5   :  { %v1989_v56 = vpop.f32.mrb[11].mxu0 }
 0x448   :  { %v500_v6 = vpop.permute.xlu0 %499 }
 0x449   :  { %v502_v7 = vpop.permute.xlu1 %501 }
 0x44a   :  { %v503_v9 = vsel %vm402_vm7, %v500_v6, %v502_v7 }
 0x44b   :  { %v505_v11 = vadd.f32 %v503_v9, %v495_v34 }
 0x44c   :  { %v552_v13 = vpop.permute.xlu0 %551 }
 0x44d   :  { %v1865_v15 = vmul.f32 -1.442695, %v505_v11  ;;  %v554_v16 = vmul.f32 %v2151_v12, %v552_v13  ;;  %v514_v20 = vpop.permute.xlu1 %513 }
 0x44f   :  { %2152 = vpow2.f32 %v1865_v15  ;;  %556 = vrot.lane.b32.xlu0 %v554_v16, %s2312_s1 }
 0x453   :  { %571 = vperm.xlu0 %2112, %v1819_v29  }
 0x459   :  { %v2153_v17 = vpop.eup %2152 }
 0x45a   :  { %v509_v18 = vadd.f32 1.0, %v2153_v17 }
 0x45c   :  { %2154 = vrcp.f32 %v509_v18 }
 0x466   :  { %v2155_v19 = vpop.eup %2154 }
 0x467   :  { %v516_v21 = vmul.f32 %v2155_v19, %v514_v20  ;;  %v523_v1 = vsub.f32 1.0, %v2155_v19  ;;  %v529_v7 = vmul.f32 0.0, %v2155_v19 }
 0x469   :  { %518 = vrot.lane.b32.xlu1 %v516_v21, %s2312_s1 }
 0x4c1   :  { %v557_v22 = vpop.permute.xlu0 %556 }
 0x4c2   :  { %v559_v23 = vadd.f32 %v557_v22, %v209_v57 }
 0x4c4   :  { %2156 = vtanh.f32 %v559_v23 }
 0x4ce   :  { %v2157_v24 = vpop.eup %2156 }
 0x4cf   :  { %563 = vrot.lane.b32.xlu1 %v2157_v24, %s2313_s23 }
 0x4d2   :  { %v2577_v60 = vpop.permute.xlu0 %571 }
 0x4db   :  { %v519_v30 = vpop.permute.xlu1 %518 }
 0x4dc   :  { %v521_v31 = vadd.f32 %v519_v30, %v496_v14 }
 0x4de   :  { %2158 = vtanh.f32 %v521_v31  ;;  %v214_v31 = vadd.f32 %v2407_v25, %v2382_v8 }
 0x4e8   :  { %v2159_v32 = vpop.eup %2158 }
 0x4e9   :  { %525 = vrot.lane.b32.xlu0 %v2159_v32, %s2313_s23 }
 0x541   :  { %v564_v34 = vpop.permute.xlu1 %563 }
 0x542   :  { %v566_v55 = vmul.f32 %v564_v34, %v561_v33 }
 0x544   :  { %v568_v56 = vadd.f32 %v567_v53, %v566_v55 }
 0x546   :  { %v575_v57 = vsub.f32 %v568_v56, %v2463_v59  ;;  %v574_v63 = vmul.f32 %v2577_v60, %v568_v56 }
 0x548   :  { %v576_v61 = vmul.f32 %v575_v57, %v2577_v60 }
 0x54a   :  { %v2581_v52 = vadd.f32 %v576_v61, %v2463_v59 }
 0x54c   :  { %579 = vrot.lane.b32.xlu1 %v2581_v52, %s2313_s23 }
 0x550   :  { %587 = vrot.lane.b32.xlu1 %v574_v63, %s2310_s20 }
 0x55b   :  { %v526_v6 = vpop.permute.xlu0 %525 }
 0x55c   :  { %v528_v9 = vmul.f32 %v526_v6, %v523_v1 }
 0x55e   :  { %v530_v11 = vadd.f32 %v529_v7, %v528_v9 }
 0x560   :  { %v2588_v12 = vmul.f32 %v530_v11, %v2459_v58 }
 0x562   :  { %583 = vrot.lane.b32.xlu0 %v2588_v12, %s2312_s1 }
 0x5be   :  { %v580_v59 = vpop.permute.xlu1 %579 }
 0x5c2   :  { %v588_v15 = vpop.permute.xlu1 %587 }
 0x5d4   :  { %v584_v13 = vpop.permute.xlu0 %583 }
 0x5d5   :  { %v590_v16 = vsel %vm302_vm6, %v580_v59, %v584_v13 }
 0x5d6   :  { %v591_v29 = vsel %vm158_vm5, %v590_v16, %v588_v15  ;;  %v1820_v15 = vsel %vm48_vm14, 1.0, %v2311_v10 }
 0x5d7   :  { %v592_v17 = vpack.c.bf16 %v591_v29, %v591_v29 }
 0x5d9   :  { %1867 = vmatmul.mubr.msk.bf16.vlgmr.msra.gmra.mrb[4].mxu1 %vm402_vm7, %v592_v17  ;;  %2003 = vmatmul.mubr.msk.bf16.vlgmr.msra.gmra.mrb[12].mxu0 %vm402_vm7, %v592_v17 }
 0x5da   :  { %778 = vmatpush1.bf16.msra.mxu1 %v2418_v40  ;;  %2007 = vmatpush3.bf16.msra.mxu0 %v2453_v51 }
 0x5db   :  { %779 = vmatprep.subr.bf16.mxu1 %v2420_v41  ;;  %2008 = vmatprep.subr.bf16.mxu0 %v2311_v10 }
 0x5dc   :  { %809 = vmatprep.mubr.bf16.mxu1 %v2309_v0  ;;  %2018 = vmatprep.mubr.msk.bf16.mxu0 %vm2314_vm12, %v2311_v10 }
 0x5de   :  { %780 = vmatpush1.bf16.msra.mxu1 %v2424_v42  ;;  %2009 = vmatpush3.bf16.msra.mxu0 %v2456_v54 }
 0x5df   :  { %781 = vmatprep.subr.bf16.mxu1 %v2427_v43  ;;  %2010 = vmatprep.subr.bf16.mxu0 %v2311_v10 }
 0x5e2   :  { %782 = vmatpush1.bf16.msra.mxu1 %v2430_v44  ;;  %2011 = vmatpush3.bf16.msra.mxu0 %v2476_v62 }
 0x5e3   :  { %783 = vmatprep.subr.bf16.mxu1 %v2433_v45  ;;  %2012 = vmatprep.subr.bf16.mxu0 %v2311_v10 }
 0x5e6   :  { %784 = vmatpush1.bf16.msra.mxu1 %v2436_v46  ;;  %2013 = vmatpush3.bf16.msra.mxu0 %v2486_v2 }
 0x5e7   :  { %785 = vmatprep.subr.bf16.mxu1 %v2439_v47  ;;  %2014 = vmatprep.subr.bf16.mxu0 %v2311_v10 }
 0x5ea   :  { %786 = vmatpush1.bf16.msra.mxu1 %v2442_v48  ;;  %2015 = vmatpush3.bf16.msra.mxu0 %v2490_v3 }
 0x5eb   :  { %787 = vmatprep.subr.bf16.mxu1 %v2446_v49  ;;  %2016 = vmatprep.subr.bf16.mxu0 %v2311_v10 }
 0x5ee   :  { %788 = vmatpush1.bf16.msra.mxu1 %v2448_v50  ;;  %2017 = vmatpush3.bf16.msra.mxu0 %v2495_v4 }
 0x5ef   :  { %958 = vmatprep.subr.bf16.mxu1 %v2416_v39  ;;  %2022 = vmatprep.subr.bf16.mxu0 %v2311_v10 }
 0x6ac   :  { %v630_v58 = vpop.f32.mrb[4].mxu1  ;;  %v671_v18 = vpop.f32.mrb[12].mxu0 }
 0x6ad   :  { %v2004_v19 = vpop.f32.mrb[13].mxu0  ;;  %681 = vrot.lane.b32.xlu0 %v630_v58, %s2313_s23  ;;  %v632_v20 = vpop.f32.mrb[5].mxu1  ;;  %v730_v30 = vadd.f32 %v630_v58, %v2547_v26  ;;  %v723_v32 = vadd.f32 %v630_v58, %v214_v31  ;;  %v678_v58 = vadd.f32 %v671_v18, %v2549_v27 }
 0x6ae   :  { %v677_v21 = vadd.f32 %v632_v20, %v2549_v27  ;;  %v674_v22 = vpop.f32.mrb[14].mxu0  ;;  %683 = vrot.lane.b32.xlu1 %v632_v20, %s2313_s23  ;;  %v634_v23 = vpop.f32.mrb[6].mxu1 }
 0x6af   :  { %v635_v24 = vpop.f32.mrb[7].mxu1  ;;  %v2005_v14 = vpop.f32.mrb[15].mxu0  ;;  %v1870_v33 = vmul.f32 -1.442695, %v723_v32 }
 0x6b1   :  { %695 = vrot.lane.b32.xlu0 %v677_v21, %s2310_s20  ;;  %2160 = vpow2.f32 %v1870_v33 }
 0x6b2   :  { %732 = vrot.lane.b32.xlu1 %v730_v30, %s2312_s1 }
 0x6bb   :  { %v2161_v34 = vpop.eup %2160 }
 0x6bc   :  { %v727_v53 = vadd.f32 1.0, %v2161_v34 }
 0x6be   :  { %2162 = vrcp.f32 %v727_v53 }
 0x6c8   :  { %v2163_v63 = vpop.eup %2162 }
 0x6c9   :  { %v742_v23 = vsub.f32 1.0, %v2163_v63  ;;  %v748_v14 = vmul.f32 %v2163_v63, %v2581_v52 }
 0x71f   :  { %v682_v55 = vpop.permute.xlu0 %681 }
 0x720   :  { %v684_v56 = vpop.permute.xlu1 %683 }
 0x721   :  { %v685_v57 = vsel %vm402_vm7, %v682_v55, %v684_v56 }
 0x722   :  { %v687_v61 = vadd.f32 %v685_v57, %v677_v21 }
 0x723   :  { %v696_v59 = vpop.permute.xlu0 %695 }
 0x724   :  { %v1869_v1 = vmul.f32 -1.442695, %v687_v61  ;;  %v733_v6 = vpop.permute.xlu1 %732 }
 0x725   :  { %v735_v7 = vmul.f32 %v2163_v63, %v733_v6 }
 0x726   :  { %2164 = vpow2.f32 %v1869_v1 }
 0x727   :  { %737 = vrot.lane.b32.xlu1 %v735_v7, %s2312_s1 }
 0x730   :  { %v2165_v9 = vpop.eup %2164 }
 0x731   :  { %v691_v25 = vadd.f32 1.0, %v2165_v9 }
 0x733   :  { %2166 = vrcp.f32 %v691_v25 }
 0x73d   :  { %v2167_v11 = vpop.eup %2166 }
 0x73e   :  { %v698_v13 = vmul.f32 %v2167_v11, %v696_v59  ;;  %v705_v53 = vsub.f32 1.0, %v2167_v11  ;;  %v711_v56 = vmul.f32 %v2167_v11, %v2588_v12 }
 0x740   :  { %700 = vrot.lane.b32.xlu0 %v698_v13, %s2312_s1 }
 0x744   :  { %752 = vperm.xlu0 %2112, %v1820_v15  }
 0x799   :  { %v738_v16 = vpop.permute.xlu1 %737 }
 0x79a   :  { %v740_v29 = vadd.f32 %v738_v16, %v214_v31 }
 0x79c   :  { %2168 = vtanh.f32 %v740_v29 }
 0x7a6   :  { %v2169_v17 = vpop.eup %2168 }
 0x7a7   :  { %744 = vrot.lane.b32.xlu0 %v2169_v17, %s2313_s23 }
 0x7b2   :  { %v701_v19 = vpop.permute.xlu0 %700 }
 0x7b3   :  { %v703_v20 = vadd.f32 %v701_v19, %v678_v58 }
 0x7b5   :  { %2170 = vtanh.f32 %v703_v20 }
 0x7bf   :  { %v2171_v21 = vpop.eup %2170 }
 0x7c0   :  { %707 = vrot.lane.b32.xlu1 %v2171_v21, %s2313_s23 }
 0x7c3   :  { %v2639_v22 = vpop.permute.xlu0 %752 }
 0x819   :  { %v745_v24 = vpop.permute.xlu0 %744 }
 0x81a   :  { %v747_v30 = vmul.f32 %v745_v24, %v742_v23  ;;  %v217_v24 = vadd.f32 %v2410_v28, %v2382_v8 }
 0x81c   :  { %v749_v31 = vadd.f32 %v748_v14, %v747_v30 }
 0x81e   :  { %v756_v32 = vsub.f32 %v749_v31, %v2581_v52  ;;  %v755_v34 = vmul.f32 %v2639_v22, %v749_v31 }
 0x820   :  { %v757_v33 = vmul.f32 %v756_v32, %v2639_v22 }
 0x822   :  { %v2645_v18 = vadd.f32 %v757_v33, %v2581_v52 }
 0x824   :  { %760 = vrot.lane.b32.xlu1 %v2645_v18, %s2313_s23 }
 0x828   :  { %768 = vrot.lane.b32.xlu1 %v755_v34, %s2310_s20 }
 0x832   :  { %v708_v55 = vpop.permute.xlu1 %707 }
 0x833   :  { %v710_v57 = vmul.f32 %v708_v55, %v705_v53 }
 0x835   :  { %v2652_v61 = vadd.f32 %v711_v56, %v710_v57 }
 0x837   :  { %v720_v63 = vsub.f32 %v2652_v61, %v2588_v12 }
 0x839   :  { %v721_v52 = vmul.f32 %v720_v63, %v2577_v60 }
 0x83b   :  { %v2658_v1 = vadd.f32 %v721_v52, %v2588_v12 }
 0x83d   :  { %764 = vrot.lane.b32.xlu0 %v2658_v1, %s2312_s1 }
 0x896   :  { %v761_v6 = vpop.permute.xlu1 %760 }
 0x89a   :  { %v769_v9 = vpop.permute.xlu1 %768 }
 0x8af   :  { %v765_v7 = vpop.permute.xlu0 %764 }
 0x8b0   :  { %v771_v25 = vsel %vm302_vm6, %v761_v6, %v765_v7 }
 0x8b1   :  { %v772_v11 = vsel %vm158_vm5, %v771_v25, %v769_v9  ;;  %v1821_v25 = vsel %vm51_vm15, 1.0, %v2311_v10 }
 0x8b2   :  { %v773_v59 = vpack.c.bf16 %v772_v11, %v772_v11 }
 0x8b4   :  { %1871 = vmatmul.mubr.msk.bf16.vlgmr.msra.gmra.mrb[8].mxu1 %vm402_vm7, %v773_v59  ;;  %2019 = vmatmul.mubr.msk.bf16.vlgmr.msra.gmra.mrb[16].mxu0 %vm402_vm7, %v773_v59 }
 0x8b5   :  { %959 = vmatpush1.bf16.msra.mxu1 %v2418_v40  ;;  %2023 = vmatpush3.bf16.msra.mxu0 %v2453_v51 }
 0x8b6   :  { %960 = vmatprep.subr.bf16.mxu1 %v2420_v41  ;;  %2024 = vmatprep.subr.bf16.mxu0 %v2311_v10 }
 0x8b7   :  { %990 = vmatprep.mubr.bf16.mxu1 %v2309_v0  ;;  %2034 = vmatprep.mubr.msk.bf16.mxu0 %vm2314_vm12, %v2311_v10 }
 0x8b9   :  { %961 = vmatpush1.bf16.msra.mxu1 %v2424_v42  ;;  %2025 = vmatpush3.bf16.msra.mxu0 %v2456_v54 }
 0x8ba   :  { %962 = vmatprep.subr.bf16.mxu1 %v2427_v43  ;;  %2026 = vmatprep.subr.bf16.mxu0 %v2311_v10 }
 0x8bd   :  { %963 = vmatpush1.bf16.msra.mxu1 %v2430_v44  ;;  %2027 = vmatpush3.bf16.msra.mxu0 %v2476_v62 }
 0x8be   :  { %964 = vmatprep.subr.bf16.mxu1 %v2433_v45  ;;  %2028 = vmatprep.subr.bf16.mxu0 %v2311_v10 }
 0x8c1   :  { %965 = vmatpush1.bf16.msra.mxu1 %v2436_v46  ;;  %2029 = vmatpush3.bf16.msra.mxu0 %v2486_v2 }
 0x8c2   :  { %966 = vmatprep.subr.bf16.mxu1 %v2439_v47  ;;  %2030 = vmatprep.subr.bf16.mxu0 %v2311_v10 }
 0x8c5   :  { %967 = vmatpush1.bf16.msra.mxu1 %v2442_v48  ;;  %2031 = vmatpush3.bf16.msra.mxu0 %v2490_v3 }
 0x8c6   :  { %968 = vmatprep.subr.bf16.mxu1 %v2446_v49  ;;  %2032 = vmatprep.subr.bf16.mxu0 %v2311_v10 }
 0x8c9   :  { %969 = vmatpush1.bf16.msra.mxu1 %v2448_v50  ;;  %2033 = vmatpush3.bf16.msra.mxu0 %v2495_v4 }
 0x8ca   :  { %1135 = vmatprep.subr.bf16.mxu1 %v2416_v39  ;;  %2038 = vmatprep.subr.bf16.mxu0 %v2311_v10 }
 0x987   :  { %v811_v13 = vpop.f32.mrb[8].mxu1  ;;  %v852_v15 = vpop.f32.mrb[16].mxu0 }
 0x988   :  { %v2020_v16 = vpop.f32.mrb[17].mxu0  ;;  %862 = vrot.lane.b32.xlu0 %v811_v13, %s2313_s23  ;;  %v813_v29 = vpop.f32.mrb[9].mxu1  ;;  %v911_v23 = vadd.f32 %v811_v13, %v2547_v26  ;;  %v904_v14 = vadd.f32 %v811_v13, %v217_v24 }
 0x989   :  { %v858_v17 = vadd.f32 %v813_v29, %v2549_v27  ;;  %v855_v58 = vpop.f32.mrb[18].mxu0  ;;  %864 = vrot.lane.b32.xlu1 %v813_v29, %s2313_s23  ;;  %v815_v19 = vpop.f32.mrb[10].mxu1  ;;  %v859_v16 = vadd.f32 %v852_v15, %v2549_v27 }
 0x98a   :  { %v816_v20 = vpop.f32.mrb[11].mxu1  ;;  %v2021_v21 = vpop.f32.mrb[19].mxu0  ;;  %v1874_v30 = vmul.f32 -1.442695, %v904_v14 }
 0x98c   :  { %876 = vrot.lane.b32.xlu0 %v858_v17, %s2310_s20  ;;  %2172 = vpow2.f32 %v1874_v30 }
 0x98d   :  { %913 = vrot.lane.b32.xlu1 %v911_v23, %s2312_s1 }
 0x996   :  { %v2173_v31 = vpop.eup %2172 }
 0x997   :  { %v908_v32 = vadd.f32 1.0, %v2173_v31 }
 0x999   :  { %2174 = vrcp.f32 %v908_v32 }
 0x9a3   :  { %v2175_v56 = vpop.eup %2174 }
 0x9a4   :  { %v923_v19 = vsub.f32 1.0, %v2175_v56  ;;  %v929_v21 = vmul.f32 %v2175_v56, %v2645_v18 }
 0x9fa   :  { %v863_v33 = vpop.permute.xlu0 %862 }
 0x9fb   :  { %v865_v34 = vpop.permute.xlu1 %864 }
 0x9fc   :  { %v866_v53 = vsel %vm402_vm7, %v863_v33, %v865_v34 }
 0x9fd   :  { %v868_v55 = vadd.f32 %v866_v53, %v858_v17 }
 0x9fe   :  { %v877_v7 = vpop.permute.xlu0 %876 }
 0x9ff   :  { %v1873_v57 = vmul.f32 -1.442695, %v868_v55  ;;  %v914_v63 = vpop.permute.xlu1 %913 }
 0xa00   :  { %v916_v52 = vmul.f32 %v2175_v56, %v914_v63 }
 0xa01   :  { %2176 = vpow2.f32 %v1873_v57 }
 0xa02   :  { %918 = vrot.lane.b32.xlu1 %v916_v52, %s2312_s1 }
 0xa0b   :  { %v2177_v6 = vpop.eup %2176 }
 0xa0c   :  { %v872_v8 = vadd.f32 1.0, %v2177_v6 }
 0xa0e   :  { %2178 = vrcp.f32 %v872_v8 }
 0xa18   :  { %v2179_v28 = vpop.eup %2178 }
 0xa19   :  { %v879_v9 = vmul.f32 %v2179_v28, %v877_v7  ;;  %v886_v32 = vsub.f32 1.0, %v2179_v28  ;;  %v892_v34 = vmul.f32 %v2179_v28, %v2658_v1 }
 0xa1b   :  { %881 = vrot.lane.b32.xlu0 %v879_v9, %s2312_s1 }
 0xa1f   :  { %933 = vperm.xlu0 %2112, %v1821_v25  }
 0xa74   :  { %v919_v11 = vpop.permute.xlu1 %918 }
 0xa75   :  { %v921_v59 = vadd.f32 %v919_v11, %v217_v24 }
 0xa77   :  { %2180 = vtanh.f32 %v921_v59 }
 0xa81   :  { %v2181_v13 = vpop.eup %2180 }
 0xa82   :  { %925 = vrot.lane.b32.xlu0 %v2181_v13, %s2313_s23 }
 0xa8d   :  { %v882_v29 = vpop.permute.xlu0 %881 }
 0xa8e   :  { %v884_v17 = vadd.f32 %v882_v29, %v859_v16 }
 0xa90   :  { %2182 = vtanh.f32 %v884_v17 }
 0xa9a   :  { %v2183_v58 = vpop.eup %2182 }
 0xa9b   :  { %888 = vrot.lane.b32.xlu1 %v2183_v58, %s2313_s23 }
 0xa9e   :  { %v2709_v5 = vpop.permute.xlu0 %933 }
 0xaf4   :  { %v926_v20 = vpop.permute.xlu0 %925 }
 0xaf5   :  { %v928_v23 = vmul.f32 %v926_v20, %v923_v19 }
 0xaf7   :  { %v930_v24 = vadd.f32 %v929_v21, %v928_v23 }
 0xaf9   :  { %v937_v14 = vsub.f32 %v930_v24, %v2645_v18  ;;  %v936_v31 = vmul.f32 %v2709_v5, %v930_v24 }
 0xafb   :  { %v938_v30 = vmul.f32 %v937_v14, %v2709_v5 }
 0xafd   :  { %v2715_v15 = vadd.f32 %v938_v30, %v2645_v18  ;;  %v2781_v30 = vld [vmem:[%s3112_s0 + $0x40] sm:$0xff]  ;;  %s2315_s0 = smov [#allocation5]  }
 0xafe   :  { %vm54_vm0 = vcmp.gt.s32.totalorder %v2781_v30, 4  ;;  %vm57_vm1 = vcmp.gt.s32.totalorder %v2781_v30, 5  ;;  %vm60_vm2 = vcmp.gt.s32.totalorder %v2781_v30, 6  ;;  %vm63_vm3 = vcmp.gt.s32.totalorder %v2781_v30, 7  ;;  %s1809_s10 = sshll.u32 %s2315_s0, 4  ;;  %s1810_s10 = int_to_ptr.vmem [resolvable:$true] %s1809_s10 }
 0xaff   :  { %941 = vrot.lane.b32.xlu1 %v2715_v15, %s2313_s23  ;;  %s2280_s11 = scalar_lea.vmem %s1810_s10, 384  ;;  %p2285_p9 = scmp.lt.s32.totalorder %s1810_s10, %s1810_s10 }
 0xb00   :  { %p2281_p8 = scmp.ne.s32.totalorder %s1810_s10, %s2280_s11  ;;  %p2286_p10 = scmp.lt.s32.totalorder %s2280_s11, %s2280_s11 }
 0xb02   :  { %p2287_p11 = por %p2286_p10, %p2285_p9 }
 0xb03   :  { %949 = vrot.lane.b32.xlu1 %v936_v31, %s2310_s20  ;;  %v1822_v31 = vsel %vm54_vm0, 1.0, %v2311_v10 }
 0xb04   :  { %p2288_p12 = pnand %p2287_p11, %p2281_p8 }
 0xb0d   :  { %v889_v33 = vpop.permute.xlu1 %888 }
 0xb0e   :  { %v891_v53 = vmul.f32 %v889_v33, %v886_v32 }
 0xb10   :  { %v2722_v55 = vadd.f32 %v892_v34, %v891_v53 }
 0xb12   :  { %v901_v56 = vsub.f32 %v2722_v55, %v2658_v1 }
 0xb14   :  { %v902_v18 = vmul.f32 %v901_v56, %v2639_v22 }
 0xb16   :  { %v2728_v57 = vadd.f32 %v902_v18, %v2658_v1 }
 0xb18   :  { %945 = vrot.lane.b32.xlu0 %v2728_v57, %s2312_s1 }
 0xb71   :  { %v942_v63 = vpop.permute.xlu1 %941 }
 0xb75   :  { %v950_v6 = vpop.permute.xlu1 %949 }
 0xb8a   :  { %v946_v52 = vpop.permute.xlu0 %945 }
 0xb8b   :  { %v952_v8 = vsel %vm302_vm6, %v942_v63, %v946_v52 }
 0xb8c   :  { %v953_v28 = vsel %vm158_vm5, %v952_v8, %v950_v6 }
 0xb8d   :  { %v954_v7 = vpack.c.bf16 %v953_v28, %v953_v28 }
 0xb8f   :  { %1875 = vmatmul.mubr.msk.bf16.vlgmr.msra.gmra.mrb[12].mxu1 %vm402_vm7, %v954_v7  ;;  %2035 = vmatmul.mubr.msk.bf16.vlgmr.msra.gmra.mrb[20].mxu0 %vm402_vm7, %v954_v7 }
 0xb90   :  { %1136 = vmatpush1.bf16.msra.mxu1 %v2418_v40  ;;  %2039 = vmatpush3.bf16.msra.mxu0 %v2453_v51 }
 0xb91   :  { %1137 = vmatprep.subr.bf16.mxu1 %v2420_v41  ;;  %2040 = vmatprep.subr.bf16.mxu0 %v2311_v10 }
 0xb92   :  { %1167 = vmatprep.mubr.bf16.mxu1 %v2309_v0  ;;  %2050 = vmatprep.mubr.msk.bf16.mxu0 %vm2314_vm12, %v2311_v10 }
 0xb94   :  { %1138 = vmatpush1.bf16.msra.mxu1 %v2424_v42  ;;  %2041 = vmatpush3.bf16.msra.mxu0 %v2456_v54 }
 0xb95   :  { %1139 = vmatprep.subr.bf16.mxu1 %v2427_v43  ;;  %2042 = vmatprep.subr.bf16.mxu0 %v2311_v10 }
 0xb98   :  { %1140 = vmatpush1.bf16.msra.mxu1 %v2430_v44  ;;  %2043 = vmatpush3.bf16.msra.mxu0 %v2476_v62 }
 0xb99   :  { %1141 = vmatprep.subr.bf16.mxu1 %v2433_v45  ;;  %2044 = vmatprep.subr.bf16.mxu0 %v2311_v10 }
 0xb9c   :  { %1142 = vmatpush1.bf16.msra.mxu1 %v2436_v46  ;;  %2045 = vmatpush3.bf16.msra.mxu0 %v2486_v2 }
 0xb9d   :  { %1143 = vmatprep.subr.bf16.mxu1 %v2439_v47  ;;  %2046 = vmatprep.subr.bf16.mxu0 %v2311_v10 }
 0xba0   :  { %1144 = vmatpush1.bf16.msra.mxu1 %v2442_v48  ;;  %2047 = vmatpush3.bf16.msra.mxu0 %v2490_v3 }
 0xba1   :  { %1145 = vmatprep.subr.bf16.mxu1 %v2446_v49  ;;  %2048 = vmatprep.subr.bf16.mxu0 %v2311_v10 }
 0xba4   :  { %1146 = vmatpush1.bf16.msra.mxu1 %v2448_v50  ;;  %2049 = vmatpush3.bf16.msra.mxu0 %v2495_v4 }
 0xba5   :  { %1315 = vmatprep.subr.bf16.mxu1 %v2416_v39  ;;  %2054 = vmatprep.subr.bf16.mxu0 %v2311_v10  ;;  %v2772_v39 = vld [vmem:[%s3115_s3] ss:$0 sm:$0xff] }
 0xba6   :  { %v222_v50 = vadd.f32 %v2772_v39, %v2559_v36 }
 0xc62   :  { %v992_v40 = vpop.f32.mrb[12].mxu1  ;;  %v1033_v41 = vpop.f32.mrb[20].mxu0 }
 0xc63   :  { %v2036_v42 = vpop.f32.mrb[21].mxu0  ;;  %1043 = vrot.lane.b32.xlu0 %v992_v40, %s2313_s23  ;;  %v994_v43 = vpop.f32.mrb[13].mxu1  ;;  %v1088_v49 = vadd.f32 %v992_v40, %v2547_v26  ;;  %v1081_v1 = vadd.f32 %v992_v40, %v222_v50  ;;  %v1040_v53 = vadd.f32 %v1033_v41, %v2549_v27 }
 0xc64   :  { %v1039_v44 = vadd.f32 %v994_v43, %v2549_v27  ;;  %v1036_v45 = vpop.f32.mrb[22].mxu0  ;;  %1045 = vrot.lane.b32.xlu1 %v994_v43, %s2313_s23  ;;  %v996_v46 = vpop.f32.mrb[14].mxu1 }
 0xc65   :  { %v997_v47 = vpop.f32.mrb[15].mxu1  ;;  %v2037_v48 = vpop.f32.mrb[23].mxu0  ;;  %v1878_v9 = vmul.f32 -1.442695, %v1081_v1 }
 0xc67   :  { %1057 = vrot.lane.b32.xlu0 %v1039_v44, %s2310_s20  ;;  %2184 = vpow2.f32 %v1878_v9 }
 0xc68   :  { %1090 = vrot.lane.b32.xlu1 %v1088_v49, %s2312_s1 }
 0xc71   :  { %v2185_v25 = vpop.eup %2184 }
 0xc72   :  { %v1085_v11 = vadd.f32 1.0, %v2185_v25 }
 0xc74   :  { %2186 = vrcp.f32 %v1085_v11 }
 0xc7e   :  { %v2187_v17 = vpop.eup %2186 }
 0xc7f   :  { %v1100_v6 = vsub.f32 1.0, %v2187_v17  ;;  %v1106_v28 = vmul.f32 %v2187_v17, %v2715_v15 }
 0xcd5   :  { %v1044_v59 = vpop.permute.xlu0 %1043 }
 0xcd6   :  { %v1046_v13 = vpop.permute.xlu1 %1045 }
 0xcd7   :  { %v1047_v16 = vsel %vm402_vm7, %v1044_v59, %v1046_v13 }
 0xcd8   :  { %v1049_v29 = vadd.f32 %v1047_v16, %v1039_v44 }
 0xcd9   :  { %v1058_v24 = vpop.permute.xlu0 %1057 }
 0xcda   :  { %v1877_v58 = vmul.f32 -1.442695, %v1049_v29  ;;  %v1091_v19 = vpop.permute.xlu1 %1090  ;;  %v2816_v29 = vld [vmem:[#allocation2] ss:$12 sps:$4 sm:$0xff]  }
 0xcdb   :  { %v1093_v20 = vmul.f32 %v2187_v17, %v1091_v19  ;;  %v2827_v17 = vld [vmem:[#allocation2 + $0x18] ss:$12 sps:$4 sm:$0xff]  }
 0xcdc   :  { %2188 = vpow2.f32 %v1877_v58  ;;  %v2831_v58 = vld [vmem:[#allocation2 + $0x34] ss:$12 sps:$4 sm:$0xff]   ;;  %v2839_v19 = vld [vmem:[#allocation2 + $0x4c] ss:$12 sps:$4 sm:$0xff]  }
 0xcdd   :  { %1095 = vrot.lane.b32.xlu1 %v1093_v20, %s2312_s1  ;;  %v2843_v20 = vld [vmem:[#allocation2 + $0x48] ss:$12 sps:$4 sm:$0xff]  }
 0xce6   :  { %v2189_v21 = vpop.eup %2188 }
 0xce7   :  { %v1053_v36 = vadd.f32 1.0, %v2189_v21  ;;  %v2851_v21 = vld [vmem:[#allocation2 + $0x60] ss:$12 sps:$4 sm:$0xff]  }
 0xce9   :  { %2190 = vrcp.f32 %v1053_v36  ;;  %v2859_v36 = vld [vmem:[#allocation2 + $0x78] ss:$12 sps:$4 sm:$0xff]  }
 0xcf3   :  { %v2191_v23 = vpop.eup %2190 }
 0xcf4   :  { %v1060_v14 = vmul.f32 %v2191_v23, %v1058_v24  ;;  %v1067_v45 = vsub.f32 1.0, %v2191_v23  ;;  %v1073_v47 = vmul.f32 %v2191_v23, %v2728_v57 }
 0xcf6   :  { %1062 = vrot.lane.b32.xlu0 %v1060_v14, %s2312_s1 }
 0xcfa   :  { %1110 = vperm.xlu0 %2112, %v1822_v31  }
 0xd4f   :  { %v1096_v32 = vpop.permute.xlu1 %1095 }
 0xd50   :  { %v1098_v33 = vadd.f32 %v1096_v32, %v222_v50 }
 0xd52   :  { %2192 = vtanh.f32 %v1098_v33 }
 0xd5c   :  { %v2193_v34 = vpop.eup %2192 }
 0xd5d   :  { %1102 = vrot.lane.b32.xlu0 %v2193_v34, %s2313_s23 }
 0xd68   :  { %v1063_v56 = vpop.permute.xlu0 %1062 }
 0xd69   :  { %v1065_v18 = vadd.f32 %v1063_v56, %v1040_v53  ;;  %v225_v56 = vadd.f32 %v2772_v39, %v2563_v38 }
 0xd6b   :  { %2194 = vtanh.f32 %v1065_v18 }
 0xd75   :  { %v2195_v63 = vpop.eup %2194 }
 0xd76   :  { %1069 = vrot.lane.b32.xlu1 %v2195_v63, %s2313_s23 }
 0xd79   :  { %v2789_v52 = vpop.permute.xlu0 %1110 }
 0xdcf   :  { %v1103_v8 = vpop.permute.xlu0 %1102 }
 0xdd0   :  { %v1105_v7 = vmul.f32 %v1103_v8, %v1100_v6 }
 0xdd2   :  { %v1107_v40 = vadd.f32 %v1106_v28, %v1105_v7 }
 0xdd4   :  { %v1114_v42 = vsub.f32 %v1107_v40, %v2715_v15  ;;  %v1113_v44 = vmul.f32 %v2789_v52, %v1107_v40 }
 0xdd6   :  { %v1115_v43 = vmul.f32 %v1114_v42, %v2789_v52 }
 0xdd8   :  { %v2795_v41 = vadd.f32 %v1115_v43, %v2715_v15 }
 0xdda   :  { %1118 = vrot.lane.b32.xlu1 %v2795_v41, %s2313_s23 }
 0xdde   :  { %1126 = vrot.lane.b32.xlu1 %v1113_v44, %s2310_s20 }
 0xde8   :  { %v1070_v46 = vpop.permute.xlu1 %1069 }
 0xde9   :  { %v1072_v48 = vmul.f32 %v1070_v46, %v1067_v45 }
 0xdeb   :  { %v2802_v49 = vadd.f32 %v1073_v47, %v1072_v48 }
 0xded   :  { %v1078_v50 = vsub.f32 %v2802_v49, %v2728_v57 }
 0xdef   :  { %v1079_v15 = vmul.f32 %v1078_v50, %v2709_v5 }
 0xdf1   :  { %v2808_v1 = vadd.f32 %v1079_v15, %v2728_v57  ;;  %v2820_v57 = vld [vmem:[#allocation2 + $0x1c] ss:$12 sps:$4 sm:$0xff]  }
 0xdf3   :  { %1122 = vrot.lane.b32.xlu0 %v2808_v1, %s2312_s1 }
 0xe4c   :  { %v1119_v9 = vpop.permute.xlu1 %1118 }
 0xe50   :  { %v1127_v11 = vpop.permute.xlu1 %1126 }
 0xe65   :  { %v1123_v25 = vpop.permute.xlu0 %1122 }
 0xe66   :  { %v1129_v59 = vsel %vm302_vm6, %v1119_v9, %v1123_v25  ;;  %v1823_v9 = vsel %vm57_vm1, 1.0, %v2311_v10 }
 0xe67   :  { %v1130_v13 = vsel %vm158_vm5, %v1129_v59, %v1127_v11 }
 0xe68   :  { %v1131_v16 = vpack.c.bf16 %v1130_v13, %v1130_v13 }
 0xe6a   :  { %1879 = vmatmul.mubr.msk.bf16.vlgmr.msra.gmra.mrb[16].mxu1 %vm402_vm7, %v1131_v16  ;;  %2051 = vmatmul.mubr.msk.bf16.vlgmr.msra.gmra.mrb[24].mxu0 %vm402_vm7, %v1131_v16 }
 0xe6b   :  { %1316 = vmatpush1.bf16.msra.mxu1 %v2816_v29  ;;  %2055 = vmatpush3.bf16.msra.mxu0 %v2453_v51  ;;  %v2835_v51 = vld [vmem:[#allocation2 + $0x30] ss:$12 sps:$4 sm:$0xff]  }
 0xe6c   :  { %1317 = vmatprep.subr.bf16.mxu1 %v2820_v57  ;;  %2056 = vmatprep.subr.bf16.mxu0 %v2311_v10 }
 0xe6d   :  { %1347 = vmatprep.mubr.bf16.mxu1 %v2309_v0  ;;  %2066 = vmatprep.mubr.msk.bf16.mxu0 %vm2314_vm12, %v2311_v10 }
 0xe6f   :  { %1318 = vmatpush1.bf16.msra.mxu1 %v2827_v17  ;;  %2057 = vmatpush3.bf16.msra.mxu0 %v2456_v54  ;;  %v2847_v54 = vld [vmem:[#allocation2 + $0x64] ss:$12 sps:$4 sm:$0xff]  }
 0xe70   :  { %1319 = vmatprep.subr.bf16.mxu1 %v2831_v58  ;;  %2058 = vmatprep.subr.bf16.mxu0 %v2311_v10 }
 0xe73   :  { %1320 = vmatpush1.bf16.msra.mxu1 %v2835_v51  ;;  %2059 = vmatpush3.bf16.msra.mxu0 %v2476_v62  ;;  %v2855_v62 = vld [vmem:[#allocation2 + $0x7c] ss:$12 sps:$4 sm:$0xff]  }
 0xe74   :  { %1321 = vmatprep.subr.bf16.mxu1 %v2839_v19  ;;  %2060 = vmatprep.subr.bf16.mxu0 %v2311_v10 }
 0xe77   :  { %1322 = vmatpush1.bf16.msra.mxu1 %v2843_v20  ;;  %2061 = vmatpush3.bf16.msra.mxu0 %v2486_v2  ;;  %v2863_v2 = vld [vmem:[#allocation2 + $0x4] ss:$12 sps:$4 sm:$0xff]  }
 0xe78   :  { %1323 = vmatprep.subr.bf16.mxu1 %v2847_v54  ;;  %2062 = vmatprep.subr.bf16.mxu0 %v2311_v10 }
 0xe7b   :  { %1324 = vmatpush1.bf16.msra.mxu1 %v2851_v21  ;;  %2063 = vmatpush3.bf16.msra.mxu0 %v2490_v3 }
 0xe7c   :  { %1325 = vmatprep.subr.bf16.mxu1 %v2855_v62  ;;  %2064 = vmatprep.subr.bf16.mxu0 %v2311_v10 }
 0xe7f   :  { %1326 = vmatpush1.bf16.msra.mxu1 %v2859_v36  ;;  %2065 = vmatpush3.bf16.msra.mxu0 %v2495_v4 }
 0xe80   :  { %1495 = vmatprep.subr.bf16.mxu1 %v2863_v2  ;;  %2070 = vmatprep.subr.bf16.mxu0 %v2311_v10 }
 0xf3d   :  { %v1169_v23 = vpop.f32.mrb[16].mxu1  ;;  %v1210_v3 = vpop.f32.mrb[24].mxu0 }
 0xf3e   :  { %v2052_v24 = vpop.f32.mrb[25].mxu0  ;;  %1220 = vrot.lane.b32.xlu0 %v1169_v23, %s2313_s23  ;;  %v1171_v14 = vpop.f32.mrb[17].mxu1  ;;  %v1268_v53 = vadd.f32 %v1169_v23, %v2547_v26  ;;  %v1261_v18 = vadd.f32 %v1169_v23, %v225_v56  ;;  %v1217_v13 = vadd.f32 %v1210_v3, %v2549_v27 }
 0xf3f   :  { %v1216_v31 = vadd.f32 %v1171_v14, %v2549_v27  ;;  %v1213_v32 = vpop.f32.mrb[26].mxu0  ;;  %1222 = vrot.lane.b32.xlu1 %v1171_v14, %s2313_s23  ;;  %v1173_v33 = vpop.f32.mrb[18].mxu1 }
 0xf40   :  { %v1174_v34 = vpop.f32.mrb[19].mxu1  ;;  %v2053_v4 = vpop.f32.mrb[27].mxu0  ;;  %v1882_v63 = vmul.f32 -1.442695, %v1261_v18 }
 0xf42   :  { %1234 = vrot.lane.b32.xlu0 %v1216_v31, %s2310_s20  ;;  %2196 = vpow2.f32 %v1882_v63 }
 0xf43   :  { %1270 = vrot.lane.b32.xlu1 %v1268_v53, %s2312_s1 }
 0xf4c   :  { %v2197_v6 = vpop.eup %2196 }
 0xf4d   :  { %v1265_v8 = vadd.f32 1.0, %v2197_v6 }
 0xf4f   :  { %2198 = vrcp.f32 %v1265_v8 }
 0xf59   :  { %v2199_v43 = vpop.eup %2198 }
 0xf5a   :  { %v1286_v33 = vmul.f32 %v2199_v43, %v2795_v41 }
 0xfb0   :  { %v1221_v28 = vpop.permute.xlu0 %1220 }
 0xfb1   :  { %v1223_v7 = vpop.permute.xlu1 %1222 }
 0xfb2   :  { %v1224_v40 = vsel %vm402_vm7, %v1221_v28, %v1223_v7 }
 0xfb3   :  { %v1226_v42 = vadd.f32 %v1224_v40, %v1216_v31  ;;  %v1280_v31 = vsub.f32 1.0, %v2199_v43 }
 0xfb4   :  { %v1235_v50 = vpop.permute.xlu0 %1234 }
 0xfb5   :  { %v1881_v44 = vmul.f32 -1.442695, %v1226_v42  ;;  %v1271_v45 = vpop.permute.xlu1 %1270 }
 0xfb6   :  { %v1273_v46 = vmul.f32 %v2199_v43, %v1271_v45 }
 0xfb7   :  { %2200 = vpow2.f32 %v1881_v44 }
 0xfb8   :  { %1275 = vrot.lane.b32.xlu1 %v1273_v46, %s2312_s1 }
 0xfc1   :  { %v2201_v47 = vpop.eup %2200 }
 0xfc2   :  { %v1230_v38 = vadd.f32 1.0, %v2201_v47 }
 0xfc4   :  { %2202 = vrcp.f32 %v1230_v38 }
 0xfce   :  { %v2203_v48 = vpop.eup %2202 }
 0xfcf   :  { %v1237_v15 = vmul.f32 %v2203_v48, %v1235_v50  ;;  %v1244_v63 = vsub.f32 1.0, %v2203_v48  ;;  %v1250_v8 = vmul.f32 %v2203_v48, %v2808_v1  ;;  %v2911_v48 = vld [vmem:[#allocation2 + $0x8] ss:$12 sps:$4 sm:$0xff]   ;;  %v2926_v50 = vld [vmem:[#allocation2 + $0x38] ss:$12 sps:$4 sm:$0xff]  }
 0xfd1   :  { %1239 = vrot.lane.b32.xlu0 %v1237_v15, %s2312_s1  ;;  %v2932_v15 = vld [vmem:[#allocation2 + $0x50] ss:$12 sps:$4 sm:$0xff]  }
 0xfd5   :  { %1290 = vperm.xlu0 %2112, %v1823_v9   ;;  %v2938_v9 = vld [vmem:[#allocation2 + $0x68] ss:$12 sps:$4 sm:$0xff]  }
0x102a   :  { %v1276_v25 = vpop.permute.xlu1 %1275 }
0x102b   :  { %v1278_v11 = vadd.f32 %v1276_v25, %v225_v56  ;;  %v2944_v25 = vld [vmem:[#allocation2 + $0x80] ss:$12 sps:$4 sm:$0xff]  }
0x102d   :  { %2204 = vtanh.f32 %v1278_v11 }
0x1037   :  { %v2205_v59 = vpop.eup %2204 }
0x1038   :  { %1282 = vrot.lane.b32.xlu0 %v2205_v59, %s2313_s23 }
0x1043   :  { %v1240_v16 = vpop.permute.xlu0 %1239 }
0x1044   :  { %v1242_v23 = vadd.f32 %v1240_v16, %v1217_v13 }
0x1046   :  { %2206 = vtanh.f32 %v1242_v23 }
0x1050   :  { %v2207_v24 = vpop.eup %2206 }
0x1051   :  { %1246 = vrot.lane.b32.xlu1 %v2207_v24, %s2313_s23 }
0x1054   :  { %v2883_v14 = vpop.permute.xlu0 %1290 }
0x10aa   :  { %v1283_v32 = vpop.permute.xlu0 %1282 }
0x10ab   :  { %v1285_v34 = vmul.f32 %v1283_v32, %v1280_v31 }
0x10ad   :  { %v1287_v4 = vadd.f32 %v1286_v33, %v1285_v34 }
0x10af   :  { %v1294_v53 = vsub.f32 %v1287_v4, %v2795_v41  ;;  %v1293_v18 = vmul.f32 %v2883_v14, %v1287_v4 }
0x10b1   :  { %v1295_v56 = vmul.f32 %v1294_v53, %v2883_v14 }
0x10b3   :  { %v2889_v3 = vadd.f32 %v1295_v56, %v2795_v41 }
0x10b5   :  { %1298 = vrot.lane.b32.xlu1 %v2889_v3, %s2313_s23 }
0x10b9   :  { %1306 = vrot.lane.b32.xlu1 %v1293_v18, %s2310_s20 }
0x10c3   :  { %v1247_v6 = vpop.permute.xlu1 %1246 }
0x10c4   :  { %v1249_v28 = vmul.f32 %v1247_v6, %v1244_v63 }
0x10c6   :  { %v2896_v7 = vadd.f32 %v1250_v8, %v1249_v28 }
0x10c8   :  { %v1258_v40 = vsub.f32 %v2896_v7, %v2808_v1 }
0x10ca   :  { %v1259_v41 = vmul.f32 %v1258_v40, %v2789_v52 }
0x10cc   :  { %v2902_v42 = vadd.f32 %v1259_v41, %v2808_v1  ;;  %v2920_v1 = vld [vmem:[#allocation2 + $0x20] ss:$12 sps:$4 sm:$0xff]  }
0x10ce   :  { %1302 = vrot.lane.b32.xlu0 %v2902_v42, %s2312_s1 }
0x1127   :  { %v1299_v43 = vpop.permute.xlu1 %1298 }
0x112b   :  { %v1307_v45 = vpop.permute.xlu1 %1306 }
0x1140   :  { %v1303_v44 = vpop.permute.xlu0 %1302 }
0x1141   :  { %v1309_v46 = vsel %vm302_vm6, %v1299_v43, %v1303_v44 }
0x1142   :  { %v1310_v47 = vsel %vm158_vm5, %v1309_v46, %v1307_v45 }
0x1143   :  { %v1311_v38 = vpack.c.bf16 %v1310_v47, %v1310_v47 }
0x1145   :  { %1883 = vmatmul.mubr.msk.bf16.vlgmr.msra.gmra.mrb[20].mxu1 %vm402_vm7, %v1311_v38  ;;  %2067 = vmatmul.mubr.msk.bf16.vlgmr.msra.gmra.mrb[28].mxu0 %vm402_vm7, %v1311_v38 }
0x1146   :  { %1496 = vmatpush1.bf16.msra.mxu1 %v2816_v29  ;;  %2071 = vmatpush3.bf16.msra.mxu0 %v2911_v48 }
0x1147   :  { %1497 = vmatprep.subr.bf16.mxu1 %v2820_v57  ;;  %2072 = vmatprep.subr.bf16.mxu0 %v2311_v10 }
0x1148   :  { %1527 = vmatprep.mubr.bf16.mxu1 %v2309_v0  ;;  %2082 = vmatprep.mubr.msk.bf16.mxu0 %vm2314_vm12, %v2311_v10 }
0x114a   :  { %1498 = vmatpush1.bf16.msra.mxu1 %v2827_v17  ;;  %2073 = vmatpush3.bf16.msra.mxu0 %v2920_v1 }
0x114b   :  { %1499 = vmatprep.subr.bf16.mxu1 %v2831_v58  ;;  %2074 = vmatprep.subr.bf16.mxu0 %v2311_v10 }
0x114e   :  { %1500 = vmatpush1.bf16.msra.mxu1 %v2835_v51  ;;  %2075 = vmatpush3.bf16.msra.mxu0 %v2926_v50 }
0x114f   :  { %1501 = vmatprep.subr.bf16.mxu1 %v2839_v19  ;;  %2076 = vmatprep.subr.bf16.mxu0 %v2311_v10 }
0x1152   :  { %1502 = vmatpush1.bf16.msra.mxu1 %v2843_v20  ;;  %2077 = vmatpush3.bf16.msra.mxu0 %v2932_v15 }
0x1153   :  { %1503 = vmatprep.subr.bf16.mxu1 %v2847_v54  ;;  %2078 = vmatprep.subr.bf16.mxu0 %v2311_v10 }
0x1156   :  { %1504 = vmatpush1.bf16.msra.mxu1 %v2851_v21  ;;  %2079 = vmatpush3.bf16.msra.mxu0 %v2938_v9 }
0x1157   :  { %1505 = vmatprep.subr.bf16.mxu1 %v2855_v62  ;;  %2080 = vmatprep.subr.bf16.mxu0 %v2311_v10 }
0x115a   :  { %1506 = vmatpush1.bf16.msra.mxu1 %v2859_v36  ;;  %2081 = vmatpush3.bf16.msra.mxu0 %v2944_v25 }
0x115b   :  { %1675 = vmatprep.subr.bf16.mxu1 %v2863_v2  ;;  %2086 = vmatprep.subr.bf16.mxu0 %v2311_v10  ;;  %v230_v2 = vadd.f32 %v2772_v39, %v2557_v35 }
0x1218   :  { %v1349_v11 = vpop.f32.mrb[20].mxu1  ;;  %v1390_v59 = vpop.f32.mrb[28].mxu0 }
0x1219   :  { %v2068_v13 = vpop.f32.mrb[29].mxu0  ;;  %1400 = vrot.lane.b32.xlu0 %v1349_v11, %s2313_s23  ;;  %v1351_v16 = vpop.f32.mrb[21].mxu1  ;;  %v1448_v34 = vadd.f32 %v1349_v11, %v2547_v26  ;;  %v1441_v4 = vadd.f32 %v1349_v11, %v230_v2  ;;  %v1824_v11 = vsel %vm60_vm2, 1.0, %v2311_v10 }
0x121a   :  { %v1396_v23 = vadd.f32 %v1351_v16, %v2549_v27  ;;  %v1393_v24 = vpop.f32.mrb[30].mxu0  ;;  %1402 = vrot.lane.b32.xlu1 %v1351_v16, %s2313_s23  ;;  %v1353_v31 = vpop.f32.mrb[22].mxu1 }
0x121b   :  { %v1354_v32 = vpop.f32.mrb[23].mxu1  ;;  %v2069_v33 = vpop.f32.mrb[31].mxu0  ;;  %v1886_v53 = vmul.f32 -1.442695, %v1441_v4  ;;  %v1397_v24 = vadd.f32 %v1390_v59, %v2549_v27 }
0x121d   :  { %1414 = vrot.lane.b32.xlu0 %v1396_v23, %s2310_s20  ;;  %2208 = vpow2.f32 %v1886_v53 }
0x121e   :  { %1450 = vrot.lane.b32.xlu1 %v1448_v34, %s2312_s1 }
0x1227   :  { %v2209_v56 = vpop.eup %2208 }
0x1228   :  { %v1445_v18 = vadd.f32 1.0, %v2209_v56 }
0x122a   :  { %2210 = vrcp.f32 %v1445_v18 }
0x1234   :  { %v2211_v40 = vpop.eup %2210 }
0x1235   :  { %v1460_v4 = vsub.f32 1.0, %v2211_v40  ;;  %v1466_v56 = vmul.f32 %v2211_v40, %v2889_v3 }
0x128b   :  { %v1401_v63 = vpop.permute.xlu0 %1400 }
0x128c   :  { %v1403_v6 = vpop.permute.xlu1 %1402 }
0x128d   :  { %v1404_v8 = vsel %vm402_vm7, %v1401_v63, %v1403_v6 }
0x128e   :  { %v1406_v28 = vadd.f32 %v1404_v8, %v1396_v23 }
0x128f   :  { %v1415_v47 = vpop.permute.xlu0 %1414 }
0x1290   :  { %v1885_v41 = vmul.f32 -1.442695, %v1406_v28  ;;  %v1451_v43 = vpop.permute.xlu1 %1450 }
0x1291   :  { %v1453_v44 = vmul.f32 %v2211_v40, %v1451_v43 }
0x1292   :  { %2212 = vpow2.f32 %v1885_v41 }
0x1293   :  { %1455 = vrot.lane.b32.xlu1 %v1453_v44, %s2312_s1 }
0x129c   :  { %v2213_v45 = vpop.eup %2212 }
0x129d   :  { %v1410_v35 = vadd.f32 1.0, %v2213_v45 }
0x129f   :  { %2214 = vrcp.f32 %v1410_v35 }
0x12a9   :  { %v2215_v46 = vpop.eup %2214 }
0x12aa   :  { %v1417_v38 = vmul.f32 %v2215_v46, %v1415_v47  ;;  %v1424_v28 = vsub.f32 1.0, %v2215_v46  ;;  %v1430_v40 = vmul.f32 %v2215_v46, %v2902_v42 }
0x12ac   :  { %1419 = vrot.lane.b32.xlu0 %v1417_v38, %s2312_s1 }
0x12b0   :  { %1470 = vperm.xlu0 %2112, %v1824_v11  }
0x1305   :  { %v1456_v13 = vpop.permute.xlu1 %1455 }
0x1306   :  { %v1458_v16 = vadd.f32 %v1456_v13, %v230_v2 }
0x1308   :  { %2216 = vtanh.f32 %v1458_v16 }
0x1312   :  { %v2217_v23 = vpop.eup %2216 }
0x1313   :  { %1462 = vrot.lane.b32.xlu0 %v2217_v23, %s2313_s23 }
0x131e   :  { %v1420_v31 = vpop.permute.xlu0 %1419 }
0x131f   :  { %v1422_v32 = vadd.f32 %v1420_v31, %v1397_v24 }
0x1321   :  { %2218 = vtanh.f32 %v1422_v32 }
0x132b   :  { %v2219_v33 = vpop.eup %2218 }
0x132c   :  { %1426 = vrot.lane.b32.xlu1 %v2219_v33, %s2313_s23 }
0x132f   :  { %v2965_v34 = vpop.permute.xlu0 %1470 }
0x1385   :  { %v1463_v53 = vpop.permute.xlu0 %1462 }
0x1386   :  { %v1465_v18 = vmul.f32 %v1463_v53, %v1460_v4  ;;  %v1825_v53 = vsel %vm63_vm3, 1.0, %v2311_v10 }
0x1388   :  { %v1467_v2 = vadd.f32 %v1466_v56, %v1465_v18 }
0x138a   :  { %v1474_v63 = vsub.f32 %v1467_v2, %v2889_v3  ;;  %v1473_v8 = vmul.f32 %v2965_v34, %v1467_v2 }
0x138c   :  { %v1475_v6 = vmul.f32 %v1474_v63, %v2965_v34 }
0x138e   :  { %v2971_v59 = vadd.f32 %v1475_v6, %v2889_v3 }
0x1390   :  { %1478 = vrot.lane.b32.xlu1 %v2971_v59, %s2313_s23 }
0x1394   :  { %1486 = vrot.lane.b32.xlu1 %v1473_v8, %s2310_s20 }
0x139e   :  { %v1427_v41 = vpop.permute.xlu1 %1426 }
0x139f   :  { %v1429_v43 = vmul.f32 %v1427_v41, %v1424_v28 }
0x13a1   :  { %v2978_v44 = vadd.f32 %v1430_v40, %v1429_v43 }
0x13a3   :  { %v1438_v45 = vsub.f32 %v2978_v44, %v2902_v42 }
0x13a5   :  { %v1439_v3 = vmul.f32 %v1438_v45, %v2883_v14 }
0x13a7   :  { %v2984_v35 = vadd.f32 %v1439_v3, %v2902_v42 }
0x13a9   :  { %1482 = vrot.lane.b32.xlu0 %v2984_v35, %s2312_s1 }
0x1402   :  { %v1479_v47 = vpop.permute.xlu1 %1478 }
0x1406   :  { %v1487_v11 = vpop.permute.xlu1 %1486 }
0x141b   :  { %v1483_v38 = vpop.permute.xlu0 %1482 }
0x141c   :  { %v1489_v13 = vsel %vm302_vm6, %v1479_v47, %v1483_v38 }
0x141d   :  { %v1490_v46 = vsel %vm158_vm5, %v1489_v13, %v1487_v11 }
0x141e   :  { %v1491_v16 = vpack.c.bf16 %v1490_v46, %v1490_v46 }
0x1420   :  { %1887 = vmatmul.mubr.msk.bf16.vlgmr.msra.gmra.mrb[24].mxu1 %vm402_vm7, %v1491_v16  ;;  %2083 = vmatmul.mubr.msk.bf16.vlgmr.msra.gmra.mrb[32].mxu0 %vm402_vm7, %v1491_v16 }
0x1421   :  { %1676 = vmatpush1.bf16.msra.mxu1 %v2816_v29  ;;  %2087 = vmatpush3.bf16.msra.mxu0 %v2911_v48 }
0x1422   :  { %1677 = vmatprep.subr.bf16.mxu1 %v2820_v57  ;;  %2088 = vmatprep.subr.bf16.mxu0 %v2311_v10 }
0x1423   :  { %1707 = vmatprep.mubr.bf16.mxu1 %v2309_v0  ;;  %2098 = vmatprep.mubr.msk.bf16.mxu0 %vm2314_vm12, %v2311_v10 }
0x1425   :  { %1678 = vmatpush1.bf16.msra.mxu1 %v2827_v17  ;;  %2089 = vmatpush3.bf16.msra.mxu0 %v2920_v1 }
0x1426   :  { %1679 = vmatprep.subr.bf16.mxu1 %v2831_v58  ;;  %2090 = vmatprep.subr.bf16.mxu0 %v2311_v10 }
0x1429   :  { %1680 = vmatpush1.bf16.msra.mxu1 %v2835_v51  ;;  %2091 = vmatpush3.bf16.msra.mxu0 %v2926_v50 }
0x142a   :  { %1681 = vmatprep.subr.bf16.mxu1 %v2839_v19  ;;  %2092 = vmatprep.subr.bf16.mxu0 %v2311_v10 }
0x142d   :  { %1682 = vmatpush1.bf16.msra.mxu1 %v2843_v20  ;;  %2093 = vmatpush3.bf16.msra.mxu0 %v2932_v15 }
0x142e   :  { %1683 = vmatprep.subr.bf16.mxu1 %v2847_v54  ;;  %2094 = vmatprep.subr.bf16.mxu0 %v2311_v10 }
0x1431   :  { %1684 = vmatpush1.bf16.msra.mxu1 %v2851_v21  ;;  %2095 = vmatpush3.bf16.msra.mxu0 %v2938_v9 }
0x1432   :  { %1685 = vmatprep.subr.bf16.mxu1 %v2855_v62  ;;  %2096 = vmatprep.subr.bf16.mxu0 %v2311_v10  ;;  %v233_v62 = vadd.f32 %v2772_v39, %v2561_v37 }
0x1435   :  { %1686 = vmatpush1.bf16.msra.mxu1 %v2859_v36  ;;  %2097 = vmatpush3.bf16.msra.mxu0 %v2944_v25 }
0x14f3   :  { %v1529_v0 = vpop.f32.mrb[24].mxu1  ;;  %v1570_v29 = vpop.f32.mrb[32].mxu0 }
0x14f4   :  { %v2084_v57 = vpop.f32.mrb[33].mxu0  ;;  %1580 = vrot.lane.b32.xlu0 %v1529_v0, %s2313_s23  ;;  %v1531_v17 = vpop.f32.mrb[25].mxu1  ;;  %v1628_v21 = vadd.f32 %v1529_v0, %v2547_v26  ;;  %v1621_v36 = vadd.f32 %v1529_v0, %v233_v62  ;;  %v1577_v63 = vadd.f32 %v1570_v29, %v2549_v27 }
0x14f5   :  { %v1576_v58 = vadd.f32 %v1531_v17, %v2549_v27  ;;  %v1573_v51 = vpop.f32.mrb[34].mxu0  ;;  %1582 = vrot.lane.b32.xlu1 %v1531_v17, %s2313_s23  ;;  %v1533_v19 = vpop.f32.mrb[26].mxu1 }
0x14f6   :  { %v1534_v20 = vpop.f32.mrb[27].mxu1  ;;  %v2085_v54 = vpop.f32.mrb[35].mxu0  ;;  %v1890_v42 = vmul.f32 -1.442695, %v1621_v36 }
0x14f8   :  { %1594 = vrot.lane.b32.xlu0 %v1576_v58, %s2310_s20  ;;  %2220 = vpow2.f32 %v1890_v42 }
0x14f9   :  { %1630 = vrot.lane.b32.xlu1 %v1628_v21, %s2312_s1 }
0x1502   :  { %v2221_v48 = vpop.eup %2220 }
0x1503   :  { %v1625_v1 = vadd.f32 1.0, %v2221_v48 }
0x1505   :  { %2222 = vrcp.f32 %v1625_v1 }
0x150f   :  { %v2223_v23 = vpop.eup %2222 }
0x1510   :  { %v1640_v41 = vsub.f32 1.0, %v2223_v23  ;;  %v1646_v10 = vmul.f32 %v2223_v23, %v2971_v59 }
0x1566   :  { %v1581_v50 = vpop.permute.xlu0 %1580 }
0x1567   :  { %v1583_v15 = vpop.permute.xlu1 %1582 }
0x1568   :  { %v1584_v9 = vsel %vm402_vm7, %v1581_v50, %v1583_v15 }
0x1569   :  { %v1586_v25 = vadd.f32 %v1584_v9, %v1576_v58 }
0x156a   :  { %v1595_v33 = vpop.permute.xlu0 %1594 }
0x156b   :  { %v1889_v26 = vmul.f32 -1.442695, %v1586_v25  ;;  %v1631_v24 = vpop.permute.xlu1 %1630 }
0x156c   :  { %v1633_v31 = vmul.f32 %v2223_v23, %v1631_v24 }
0x156d   :  { %2224 = vpow2.f32 %v1889_v26 }
0x156e   :  { %1635 = vrot.lane.b32.xlu1 %v1633_v31, %s2312_s1 }
0x1577   :  { %v2225_v32 = vpop.eup %2224 }
0x1578   :  { %v1590_v37 = vadd.f32 1.0, %v2225_v32 }
0x157a   :  { %2226 = vrcp.f32 %v1590_v37 }
0x1584   :  { %v2227_v39 = vpop.eup %2226 }
0x1585   :  { %v1597_v4 = vmul.f32 %v2227_v39, %v1595_v33  ;;  %v1604_v13 = vsub.f32 1.0, %v2227_v39  ;;  %v1610_v16 = vmul.f32 %v2227_v39, %v2984_v35 }
0x1587   :  { %1599 = vrot.lane.b32.xlu0 %v1597_v4, %s2312_s1 }
0x158b   :  { %1650 = vperm.xlu0 %2112, %v1825_v53   ;;  %v713_v53 = vmul.f32 %v2652_v61, %v2577_v60  ;;  %v1075_v60 = vmul.f32 %v2802_v49, %v2709_v5 }
0x15e0   :  { %v1636_v56 = vpop.permute.xlu1 %1635 }
0x15e1   :  { %v1638_v18 = vadd.f32 %v1636_v56, %v233_v62  ;;  %v894_v56 = vmul.f32 %v2722_v55, %v2639_v22  ;;  %v1432_v55 = vmul.f32 %v2978_v44, %v2883_v14 }
0x15e3   :  { %2228 = vtanh.f32 %v1638_v18 }
0x15ed   :  { %v2229_v2 = vpop.eup %2228 }
0x15ee   :  { %1642 = vrot.lane.b32.xlu0 %v2229_v2, %s2313_s23 }
0x15f9   :  { %v1600_v6 = vpop.permute.xlu0 %1599 }
0x15fa   :  { %v1602_v8 = vadd.f32 %v1600_v6, %v1577_v63 }
0x15fc   :  { %2230 = vtanh.f32 %v1602_v8 }
0x1606   :  { %v2231_v28 = vpop.eup %2230 }
0x1607   :  { %1606 = vrot.lane.b32.xlu1 %v2231_v28, %s2313_s23 }
0x160a   :  { %v3033_v30 = vpop.permute.xlu0 %1650 }
0x1660   :  { %v1643_v40 = vpop.permute.xlu0 %1642 }
0x1661   :  { %v1645_v43 = vmul.f32 %v1643_v40, %v1640_v41 }
0x1663   :  { %v1647_v45 = vadd.f32 %v1646_v10, %v1645_v43 }
0x1665   :  { %v1654_v3 = vsub.f32 %v1647_v45, %v2971_v59  ;;  %v1653_v11 = vmul.f32 %v3033_v30, %v1647_v45 }
0x1667   :  { %v1655_v47 = vmul.f32 %v1654_v3, %v3033_v30 }
0x1669   :  { %v1656_v38 = vadd.f32 %v1655_v47, %v2971_v59 }
0x166b   :  { %1658 = vrot.lane.b32.xlu1 %v1656_v38, %s2313_s23 }
0x166f   :  { %1666 = vrot.lane.b32.xlu1 %v1653_v11, %s2310_s20 }
0x1679   :  { %v1607_v46 = vpop.permute.xlu1 %1606 }
0x167a   :  { %v1609_v0 = vmul.f32 %v1607_v46, %v1604_v13 }
0x167c   :  { %v3043_v29 = vadd.f32 %v1610_v16, %v1609_v0 }
0x167e   :  { %v1618_v57 = vsub.f32 %v3043_v29, %v2984_v35  ;;  %v1612_v5 = vmul.f32 %v3043_v29, %v2965_v34 }
0x1680   :  { %v1619_v17 = vmul.f32 %v1618_v57, %v2965_v34 }
0x1682   :  { %v3049_v59 = vadd.f32 %v1619_v17, %v2984_v35 }
0x1684   :  { %1662 = vrot.lane.b32.xlu0 %v3049_v59, %s2312_s1 }
0x16dd   :  { %v1659_v58 = vpop.permute.xlu1 %1658 }
0x16de   :  { %1797 = vst.msk [vmem:[#allocation5 + $0x10] sm:$0xff] %vm302_vm6, %v1659_v58 }
0x16e1   :  { %v1667_v19 = vpop.permute.xlu1 %1666 }
0x16f6   :  { %v1663_v51 = vpop.permute.xlu0 %1662 }
0x16f7   :  { %v1669_v20 = vsel %vm302_vm6, %v1659_v58, %v1663_v51 }
0x16f8   :  { %v1670_v54 = vsel %vm158_vm5, %v1669_v20, %v1667_v19  ;;  %vm899_vm5 = vcmask 785920  }
0x16f9   :  { %v1671_v21 = vpack.c.bf16 %v1670_v54, %v1670_v54 }
0x16fb   :  { %1891 = vmatmul.mubr.msk.bf16.vlgmr.msra.gmra.mrb[28].mxu1 %vm402_vm7, %v1671_v21  ;;  %2099 = vmatmul.mubr.msk.bf16.vlgmr.msra.gmra.mrb[36].mxu0 %vm402_vm7, %v1671_v21 }
0x17ce   :  { %v1709_v62 = vpop.f32.mrb[28].mxu1  ;;  %v1750_v35 = vpop.f32.mrb[36].mxu0 }
0x17cf   :  { %v2100_v36 = vpop.f32.mrb[37].mxu0  ;;  %1760 = vrot.lane.b32.xlu0 %v1709_v62, %s2313_s23  ;;  %v1711_v42 = vpop.f32.mrb[29].mxu1  ;;  %v1757_v18 = vadd.f32 %v1750_v35, %v2549_v27 }
0x17d0   :  { %v1756_v48 = vadd.f32 %v1711_v42, %v2549_v27  ;;  %v1753_v1 = vpop.f32.mrb[38].mxu0  ;;  %1762 = vrot.lane.b32.xlu1 %v1711_v42, %s2313_s23  ;;  %v1713_v50 = vpop.f32.mrb[30].mxu1  ;;  %v1252_v27 = vmul.f32 %v2896_v7, %v2789_v52 }
0x17d1   :  { %v1714_v15 = vpop.f32.mrb[31].mxu1  ;;  %v2101_v9 = vpop.f32.mrb[39].mxu0 }
0x17d3   :  { %1774 = vrot.lane.b32.xlu0 %v1756_v48, %s2310_s20 }
0x1841   :  { %v1761_v25 = vpop.permute.xlu0 %1760 }
0x1842   :  { %v1763_v23 = vpop.permute.xlu1 %1762 }
0x1843   :  { %v1764_v26 = vsel %vm402_vm7, %v1761_v25, %v1763_v23  ;;  %vm1076_vm7 = vcmask 1048320  }
0x1844   :  { %v1766_v24 = vadd.f32 %v1764_v26, %v1756_v48 }
0x1845   :  { %v1775_v33 = vpop.permute.xlu0 %1774 }
0x1846   :  { %v1893_v31 = vmul.f32 -1.442695, %v1766_v24 }
0x1848   :  { %2232 = vpow2.f32 %v1893_v31 }
0x1852   :  { %v2233_v32 = vpop.eup %2232 }
0x1853   :  { %v1770_v37 = vadd.f32 1.0, %v2233_v32 }
0x1855   :  { %2234 = vrcp.f32 %v1770_v37 }
0x185f   :  { %v2235_v39 = vpop.eup %2234 }
0x1860   :  { %v1777_v4 = vmul.f32 %v2235_v39, %v1775_v33  ;;  %v1784_v49 = vsub.f32 1.0, %v2235_v39  ;;  %v1790_v28 = vmul.f32 %v2235_v39, %v3049_v59 }
0x1862   :  { %1779 = vrot.lane.b32.xlu1 %v1777_v4, %s2312_s1 }
0x1866   :  { %533 = vrot.lane.b32.xlu1 %v2588_v12, %s2310_s20 }
0x186a   :  { %715 = vrot.lane.b32.xlu1 %v713_v53, %s2312_s1 }
0x186e   :  { %896 = vrot.lane.b32.xlu1 %v894_v56, %s2313_s23 }
0x18d4   :  { %v1780_v2 = vpop.permute.xlu1 %1779 }
0x18d5   :  { %v1782_v63 = vadd.f32 %v1780_v2, %v1757_v18 }
0x18d7   :  { %2236 = vtanh.f32 %v1782_v63 }
0x18d8   :  { %v534_v6 = vpop.permute.xlu1 %533 }
0x18d9   :  { %536 = vst.msk [vmem:[#allocation5] sm:$0xff] %vm302_vm6, %v534_v6 }
0x18dc   :  { %v716_v12 = vpop.permute.xlu1 %715 }
0x18dd   :  { %719 = vst.msk [vmem:[#allocation5] sm:$0xff] %vm718_vm4, %v716_v12 }
0x18e0   :  { %v897_v22 = vpop.permute.xlu1 %896 }
0x18e1   :  { %v2237_v61 = vpop.eup %2236  ;;  %900 = vst.msk [vmem:[#allocation5] sm:$0xff] %vm899_vm5, %v897_v22 }
0x18e2   :  { %1786 = vrot.lane.b32.xlu0 %v2237_v61, %s2313_s23  ;;  %1077 = vst.msk [vmem:[#allocation5] sm:$0xff] %vm1076_vm7, %v1075_v60 }
0x18e6   :  { %1254 = vrot.lane.b32.xlu0 %v1252_v27, %s2310_s20 }
0x18ea   :  { %1434 = vrot.lane.b32.xlu0 %v1432_v55, %s2312_s1 }
0x18ee   :  { %1614 = vrot.lane.b32.xlu0 %v1612_v5, %s2313_s23 }
0x1954   :  { %v1787_v8 = vpop.permute.xlu0 %1786 }
0x1955   :  { %v1789_v41 = vmul.f32 %v1787_v8, %v1784_v49 }
0x1957   :  { %v1791_v40 = vadd.f32 %v1790_v28, %v1789_v41 }
0x1958   :  { %v1255_v10 = vpop.permute.xlu0 %1254 }
0x1959   :  { %v1794_v52 = vsub.f32 %v1791_v40, %v3049_v59  ;;  %1257 = vst.msk [vmem:[#allocation5 + $0x8] sm:$0xff] %vm302_vm6, %v1255_v10  ;;  %v1792_v44 = vmul.f32 %v1791_v40, %v3033_v30 }
0x195b   :  { %v1795_v14 = vmul.f32 %v1794_v52, %v3033_v30 }
0x195c   :  { %v1435_v7 = vpop.permute.xlu0 %1434 }
0x195d   :  { %1437 = vst.msk [vmem:[#allocation5 + $0x8] sm:$0xff] %vm718_vm4, %v1435_v7  ;;  %v1796_v34 = vadd.f32 %v1795_v14, %v3049_v59 }
0x195f   :  { %1799 = vrot.lane.b32.xlu1 %v1796_v34, %s2312_s1 }
0x1960   :  { %v1615_v43 = vpop.permute.xlu0 %1614 }
0x1961   :  { %1617 = vst.msk [vmem:[#allocation5 + $0x8] sm:$0xff] %vm899_vm5, %v1615_v43 }
0x1962   :  { %1793 = vst.msk [vmem:[#allocation5 + $0x8] sm:$0xff] %vm1076_vm7, %v1792_v44 }
0x19d1   :  { %v1800_v45 = vpop.permute.xlu1 %1799 }
0x19d2   :  { %1802 = vst.msk [vmem:[#allocation5 + $0x10] sm:$0xff] %vm718_vm4, %v1800_v45 }
0x19d3   :  { %2291 = shalt.err (!%p2288_p12)
}
0x19d4   :  { %s2292_s14 = scalar_lea.hbm %s3116_s4, 384 }
0x19d5   :  { %p2293_p13 = scmp.ne.s32.totalorder %s3116_s4, %s2292_s14  ;;  %p2296_p0 = scmp.lt.u32.totalorder %s2292_s14, %s3116_s4 }
0x19d7   :  { %p2298_p1 = pnand %p2296_p0, %p2293_p13 }
0x19d9   :  { %2301 = shalt.err (!%p2298_p1)
}
0x19da   :  { %1812 = dma.vmem_to_hbm [thread:$0]  %s1810_s10, 384, %s3116_s4, [#allocation4]  }
0x19db   :  { %2304 = dma.done.wait [#allocation4], 384  }
0x19dc   :  { %2305 = vsyncadd [#allocation4], 4294966912 }
0x19dd   :  { %1816 = vsyncpa [#allocation3], 1 }
0x19de   :  { %1817 = vsyncpa [#allocation4], 1 }

</bundles_post_ra>
